<compile_context>
chip_gen: v6e
topology: v6e:2x2x1
jax: 0.10.0
libtpu: 0.0.40
codegen_flags: <defaults>
</compile_context>

<pallas_src>
import functools
import math

import jax
import jax.numpy as jnp
from jax import lax
from jax.experimental import pallas as pl
from jax.experimental.pallas import tpu as pltpu


def _round_up(x, m):
    return (x + m - 1) // m * m


def _layernorm(x, gamma, beta, eps=1e-5):
    mu = jnp.mean(x, axis=-1, keepdims=True)
    var = jnp.mean((x - mu) ** 2, axis=-1, keepdims=True)
    return (x - mu) * lax.rsqrt(var + eps) * gamma + beta


def _softmax_lastdim(s):
    m = jnp.max(s, axis=-1, keepdims=True)
    p = jnp.exp(s - m)
    denom = jnp.sum(p, axis=-1, keepdims=True)
    return p * pl.reciprocal(denom, approx=True)


def _split_heads(x2d, groups, d, batch, seq):
    """(B*S, groups*d) -> (groups*B, S, d) via a single relayout."""
    n = batch * seq
    return x2d.reshape(n, groups, d).transpose(1, 0, 2).reshape(groups * batch, seq, d)


def _merge_heads(x3d, groups, d, batch, seq):
    """(groups*B, S, d) -> (B*S, groups*d) (inverse relayout)."""
    n = batch * seq
    return x3d.reshape(groups, n, d).transpose(1, 0, 2).reshape(n, groups * d)


# Rows of the sublane-major bias / LayerNorm slab (one vector per sublane row).
_ROW_BQKV, _ROW_BZ, _ROW_G1, _ROW_BE1, _ROW_B1, _ROW_B2, _ROW_G2, _ROW_BE2 = range(8)
_NUM_VEC_ROWS = 8


def fused_encoder_kernel(
    x_ref, wqkv_ref, wz_ref, w1_ref, w2_ref, vec_ref, o_ref,
    *, batch, seq, emb, head, q_k_size, v_size, f_size, nblocks,
):
    hdk = head * q_k_size
    hdv = head * v_size
    qkv_w = 2 * hdk + hdv
    hb = head * batch

    vall = vec_ref[...]                        # (nblocks, 8, W) f32, sublane-major
    x = x_ref[...].astype(jnp.float32)         # (N, E), VMEM/vreg-resident across blocks

    for bi in range(nblocks):                  # static unroll over encoder blocks
        wqkv = wqkv_ref[bi]                    # (E, 2*hdk+hdv) bf16 (1/sqrt(dk) folded into q cols)
        wz = wz_ref[bi]                        # (hdv, E) bf16
        w1 = w1_ref[bi]                        # (E, F)   bf16
        w2 = w2_ref[bi]                        # (F, E)   bf16
        vrow = vall[bi]                        # (8, W)   f32

        def vget(row, width, _v=vrow):
            # sublane-row pick + lane-prefix slice (starts at lane 0: no rotate)
            return _v[row:row + 1, :width]     # (1, width) -> broadcasts over rows

        # ---- Multi-head self-attention ------------------------------------
        # Fused QKV projection (bf16 MXU operands, f32 accumulation) + fused bias.
        qkv = jnp.dot(x.astype(jnp.bfloat16), wqkv,
                      preferred_element_type=jnp.float32) + vget(_ROW_BQKV, qkv_w)

        # One head-split relayout; q/k/v heads are then leading-dim slices.
        if q_k_size == v_size:
            allh = _split_heads(qkv, 3 * head, q_k_size, batch, seq)  # (3H*B, S, d)
            qh = allh[:hb]
            kh = allh[hb:2 * hb]
            vh = allh[2 * hb:]
        else:
            qkh = _split_heads(qkv[:, :2 * hdk], 2 * head, q_k_size, batch, seq)
            qh = qkh[:hb]
            kh = qkh[hb:]
            vh = _split_heads(qkv[:, 2 * hdk:], head, v_size, batch, seq)

        # Batched (head*B) attention: batch dim leading, contraction on the lane dim.
        s = jnp.einsum("nsd,ntd->nst",
                       qh.astype(jnp.bfloat16), kh.astype(jnp.bfloat16),
                       preferred_element_type=jnp.float32)            # (H*B, S, S) f32
        p = _softmax_lastdim(s)                                       # f32
        att = jnp.einsum("nst,ntd->nsd",
                         p.astype(jnp.bfloat16), vh.astype(jnp.bfloat16),
                         preferred_element_type=jnp.float32)          # (H*B, S, dv) f32

        # Single head-merge relayout + ONE output-projection matmul.
        att_m = _merge_heads(att, head, v_size, batch, seq)           # (N, hdv)
        z = jnp.dot(att_m.astype(jnp.bfloat16), wz,
                    preferred_element_type=jnp.float32) + vget(_ROW_BZ, emb)

        # ---- Add & Norm 1 ---------------------------------------------------
        o1 = _layernorm(z + x, vget(_ROW_G1, emb), vget(_ROW_BE1, emb))

        # ---- Feed-forward + Add & Norm 2 -------------------------------------
        f = jnp.dot(o1.astype(jnp.bfloat16), w1,
                    preferred_element_type=jnp.float32) + vget(_ROW_B1, f_size)
        f = jnp.maximum(f, 0.0)
        g = jnp.dot(f.astype(jnp.bfloat16), w2,
                    preferred_element_type=jnp.float32) + vget(_ROW_B2, emb)
        x = _layernorm(g + o1, vget(_ROW_G2, emb), vget(_ROW_BE2, emb))

    o_ref[...] = x.astype(o_ref.dtype)


def encoder_forward_pallas(x, packed, *, head, q_k_size, v_size):
    """x: (B, S, E) f32; packed: (wqkv, wz, w1, w2, vecs) stacked over nblocks."""
    wqkv, wz, w1, w2, vecs = packed
    B, S, E = x.shape
    nblocks = wqkv.shape[0]
    f_size = w1.shape[2]
    N = B * S
    hdk, hdv = head * q_k_size, head * v_size
    qkv_w = 2 * hdk + hdv

    kernel = functools.partial(
        fused_encoder_kernel,
        batch=B, seq=S, emb=E, head=head, q_k_size=q_k_size,
        v_size=v_size, f_size=f_size, nblocks=nblocks,
    )

    flops = nblocks * (
        2 * N * E * qkv_w                       # QKV projection
        + 2 * head * B * S * S * q_k_size       # QK^T
        + 2 * head * B * S * S * v_size         # PV
        + 2 * N * hdv * E                       # output projection
        + 2 * N * E * f_size                    # FF up
        + 2 * N * f_size * E                    # FF down
    )
    transcendentals = nblocks * (head * B * S * S + head * B * S + 2 * N)
    bytes_accessed = int(
        2 * x.size * x.dtype.itemsize
        + sum(int(a.size) * a.dtype.itemsize for a in (wqkv, wz, w1, w2, vecs))
    )

    vmem = pl.BlockSpec(memory_space=pltpu.MemorySpace.VMEM)
    out2 = pl.pallas_call(
        kernel,
        out_shape=jax.ShapeDtypeStruct((N, E), x.dtype),
        in_specs=[vmem] * 6,
        out_specs=vmem,
        cost_estimate=pl.CostEstimate(
            flops=int(flops),
            transcendentals=int(transcendentals),
            bytes_accessed=bytes_accessed,
        ),
    )(x.reshape(N, E), wqkv, wz, w1, w2, vecs)
    return out2.reshape(B, S, E)


def init_encoder_params(key, *, embedding_size, q_k_size, v_size, f_size, head, nblocks):
    """Deterministic synthetic parameters (weights in (in, out) layout; 2-D biases)."""
    params = []
    for bi in range(nblocks):
        k = jax.random.fold_in(key, bi)
        ks = jax.random.split(k, 16)
        std = 0.02

        def w(kk, shape):
            return (std * jax.random.normal(kk, shape)).astype(jnp.float32)

        wq = w(ks[0], (embedding_size, head * q_k_size))
        bq = w(ks[6], (1, head * q_k_size))
        wk = w(ks[1], (embedding_size, head * q_k_size))
        bk = w(ks[7], (1, head * q_k_size))
        wv = w(ks[2], (embedding_size, head * v_size))
        bv = w(ks[8], (1, head * v_size))
        wz = w(ks[3], (head * v_size, embedding_size))
        bz = w(ks[9], (1, embedding_size))
        g1 = 1.0 + w(ks[10], (1, embedding_size))
        be1 = w(ks[11], (1, embedding_size))
        w1 = w(ks[4], (embedding_size, f_size))
        b1 = w(ks[12], (1, f_size))
        w2 = w(ks[5], (f_size, embedding_size))
        b2 = w(ks[13], (1, embedding_size))
        g2 = 1.0 + w(ks[14], (1, embedding_size))
        be2 = w(ks[15], (1, embedding_size))

        params.append((wq, bq, wk, bk, wv, bv, wz, bz, g1, be1,
                       w1, b1, w2, b2, g2, be2))
    return params


def pack_params(params, *, q_k_size):
    """Pack per-block params into 5 stacked slabs.

    * wqkv / wz / w1 / w2 in bf16 (f32 accumulation happens in the kernel);
      1/sqrt(dk) folded into the wq columns / bq bias.
    * Bias & LayerNorm vectors packed SUBLANE-major: (nblocks, 8, W) f32, one
      vector per row, zero-padded to W (multiple of 128 lanes).
    """
    scale = 1.0 / math.sqrt(q_k_size)
    wqkv_l, wz_l, w1_l, w2_l, rows_l = [], [], [], [], []
    for (wq, bq, wk, bk, wv, bv, wz, bz, g1, be1,
         w1, b1, w2, b2, g2, be2) in params:
        wqkv_l.append(jnp.concatenate([wq * scale, wk, wv], axis=1))
        wz_l.append(wz)
        w1_l.append(w1)
        w2_l.append(w2)
        rows_l.append([
            jnp.concatenate([bq[0] * scale, bk[0], bv[0]], axis=0),  # fused qkv bias
            bz[0], g1[0], be1[0], b1[0], b2[0], g2[0], be2[0],
        ])

    width = _round_up(max(r.shape[0] for r in rows_l[0]), 128)

    def pad_rows(rows):
        return jnp.stack([jnp.pad(r, (0, width - r.shape[0])) for r in rows])

    wqkv = jnp.stack(wqkv_l).astype(jnp.bfloat16)
    wz = jnp.stack(wz_l).astype(jnp.bfloat16)
    w1 = jnp.stack(w1_l).astype(jnp.bfloat16)
    w2 = jnp.stack(w2_l).astype(jnp.bfloat16)
    vecs = jnp.stack([pad_rows(r) for r in rows_l]).astype(jnp.float32)
    assert vecs.shape[1] == _NUM_VEC_ROWS
    return wqkv, wz, w1, w2, vecs


def encoder_reference(x, params, *, head, q_k_size, v_size):
    """Pure-JAX f32 reference with the same semantics as the PyTorch Encoder."""
    B, S, _ = x.shape

    def ln(t, g, b, eps=1e-5):
        mu = t.mean(-1, keepdims=True)
        var = ((t - mu) ** 2).mean(-1, keepdims=True)
        return (t - mu) / jnp.sqrt(var + eps) * g + b

    for (wq, bq, wk, bk, wv, bv, wz, bz, g1, be1,
         w1, b1, w2, b2, g2, be2) in params:
        q = (x @ wq + bq[0]).reshape(B, S, head, q_k_size).transpose(0, 2, 1, 3)
        k = (x @ wk + bk[0]).reshape(B, S, head, q_k_size).transpose(0, 2, 1, 3)
        v = (x @ wv + bv[0]).reshape(B, S, head, v_size).transpose(0, 2, 1, 3)
        s = jnp.einsum("bhsd,bhtd->bhst", q, k) / math.sqrt(q_k_size)
        p = jax.nn.softmax(s, axis=-1)
        att = jnp.einsum("bhst,bhtd->bhsd", p, v)
        att = att.transpose(0, 2, 1, 3).reshape(B, S, head * v_size)
        z = att @ wz + bz[0]
        o1 = ln(z + x, g1[0], be1[0])
        f = jax.nn.relu(o1 @ w1 + b1[0])
        g = f @ w2 + b2[0]
        x = ln(g + o1, g2[0], be2[0])
    return x


if __name__ == "__main__":
    # Small shapes consistent with the module's constructor arguments.
    embedding_size = 32
    q_k_size = 8
    v_size = 8
    f_size = 64
    head = 4
    nblocks = 2

    batch, seq = 2, 8

    key = jax.random.PRNGKey(0)
    kx, kp = jax.random.split(key)
    x = jax.random.normal(kx, (batch, seq, embedding_size), dtype=jnp.float32)

    params = init_encoder_params(
        kp,
        embedding_size=embedding_size,
        q_k_size=q_k_size,
        v_size=v_size,
        f_size=f_size,
        head=head,
        nblocks=nblocks,
    )
    packed = pack_params(params, q_k_size=q_k_size)

    out = encoder_forward_pallas(
        x, packed, head=head, q_k_size=q_k_size, v_size=v_size
    )
    out = jax.block_until_ready(out)

    ref = jax.block_until_ready(
        encoder_reference(x, params, head=head, q_k_size=q_k_size, v_size=v_size)
    )

    assert out.shape == (batch, seq, embedding_size)
    assert jnp.all(jnp.isfinite(out))
    max_err = float(jnp.max(jnp.abs(out - ref)))
    # bf16 MXU operands + approx reciprocal -> mixed-precision tolerance.
    assert max_err < 5e-2, f"max abs err vs f32 reference: {max_err}"
    print("KERNEL_OK")
</pallas_src>

<mosaic_0001>
module attributes {stable_mosaic.version = 11 : i64} {
  func.func @fused_encoder_kernel(%arg0: memref<16x32xf32, #tpu.memory_space<vmem>>, %arg1: memref<2x32x96xbf16, #tpu.memory_space<vmem>>, %arg2: memref<2x32x32xbf16, #tpu.memory_space<vmem>>, %arg3: memref<2x32x64xbf16, #tpu.memory_space<vmem>>, %arg4: memref<2x64x32xbf16, #tpu.memory_space<vmem>>, %arg5: memref<2x8x128xf32, #tpu.memory_space<vmem>>, %arg6: memref<16x32xf32, #tpu.memory_space<vmem>>) attributes {dimension_semantics = [], scalar_prefetch = 0 : i64, scratch_operands = 0 : i64, tpu.core_type = #tpu.core_type<tc>} {
    %c0 = arith.constant 0 : index
    %c0_0 = arith.constant 0 : index
    %c0_1 = arith.constant 0 : index
    %0 = vector.load %arg5[%c0, %c0_0, %c0_1] : memref<2x8x128xf32, #tpu.memory_space<vmem>>, vector<2x8x128xf32>
    %c0_2 = arith.constant 0 : index
    %c0_3 = arith.constant 0 : index
    %1 = vector.load %arg0[%c0_2, %c0_3] : memref<16x32xf32, #tpu.memory_space<vmem>>, vector<16x32xf32>
    %c0_4 = arith.constant 0 : index
    %c0_5 = arith.constant 0 : index
    %c0_6 = arith.constant 0 : index
    %2 = vector.load %arg1[%c0_4, %c0_5, %c0_6] : memref<2x32x96xbf16, #tpu.memory_space<vmem>>, vector<1x32x96xbf16>
    %3 = vector.shape_cast %2 : vector<1x32x96xbf16> to vector<32x96xbf16>
    %c0_7 = arith.constant 0 : index
    %c0_8 = arith.constant 0 : index
    %c0_9 = arith.constant 0 : index
    %4 = vector.load %arg2[%c0_7, %c0_8, %c0_9] : memref<2x32x32xbf16, #tpu.memory_space<vmem>>, vector<1x32x32xbf16>
    %5 = vector.shape_cast %4 : vector<1x32x32xbf16> to vector<32x32xbf16>
    %c0_10 = arith.constant 0 : index
    %c0_11 = arith.constant 0 : index
    %c0_12 = arith.constant 0 : index
    %6 = vector.load %arg3[%c0_10, %c0_11, %c0_12] : memref<2x32x64xbf16, #tpu.memory_space<vmem>>, vector<1x32x64xbf16>
    %7 = vector.shape_cast %6 : vector<1x32x64xbf16> to vector<32x64xbf16>
    %c0_13 = arith.constant 0 : index
    %c0_14 = arith.constant 0 : index
    %c0_15 = arith.constant 0 : index
    %8 = vector.load %arg4[%c0_13, %c0_14, %c0_15] : memref<2x64x32xbf16, #tpu.memory_space<vmem>>, vector<1x64x32xbf16>
    %9 = vector.shape_cast %8 : vector<1x64x32xbf16> to vector<64x32xbf16>
    %10 = vector.extract_strided_slice %0 {offsets = [0, 0, 0], sizes = [1, 8, 128], strides = [1, 1, 1]} : vector<2x8x128xf32> to vector<1x8x128xf32>
    %11 = vector.shape_cast %10 : vector<1x8x128xf32> to vector<8x128xf32>
    %12 = arith.truncf %1 : vector<16x32xf32> to vector<16x32xbf16>
    %cst = arith.constant dense<0.000000e+00> : vector<16x96xf32>
    %13 = tpu.matmul %12, %3, %cst {dimension_numbers = #tpu.dot_dimension_numbers<[1], [0], [0], [1], [0, 0, 1, 1], [], []>} : vector<16x32xbf16>, vector<32x96xbf16>, vector<16x96xf32> -> vector<16x96xf32>
    %14 = vector.extract_strided_slice %11 {offsets = [0, 0], sizes = [1, 96], strides = [1, 1]} : vector<8x128xf32> to vector<1x96xf32>
    %15 = vector.broadcast %14 : vector<1x96xf32> to vector<16x96xf32>
    %16 = arith.addf %13, %15 : vector<16x96xf32>
    %17 = vector.shape_cast %16 : vector<16x96xf32> to vector<16x12x8xf32>
    %18 = tpu.transpose %17, [1, 0, 2] : vector<16x12x8xf32> -> vector<12x16x8xf32>
    %19 = vector.shape_cast %18 : vector<12x16x8xf32> to vector<24x8x8xf32>
    %20 = vector.extract_strided_slice %19 {offsets = [0, 0, 0], sizes = [8, 8, 8], strides = [1, 1, 1]} : vector<24x8x8xf32> to vector<8x8x8xf32>
    %21 = vector.extract_strided_slice %19 {offsets = [8, 0, 0], sizes = [8, 8, 8], strides = [1, 1, 1]} : vector<24x8x8xf32> to vector<8x8x8xf32>
    %22 = vector.extract_strided_slice %19 {offsets = [16, 0, 0], sizes = [8, 8, 8], strides = [1, 1, 1]} : vector<24x8x8xf32> to vector<8x8x8xf32>
    %23 = arith.truncf %20 : vector<8x8x8xf32> to vector<8x8x8xbf16>
    %24 = arith.truncf %21 : vector<8x8x8xf32> to vector<8x8x8xbf16>
    "tpu.trace_start"() <{level = 10 : i32, message = "nsd,ntd->nst"}> : () -> ()
    %cst_16 = arith.constant dense<0.000000e+00> : vector<8x8x8xf32>
    %25 = tpu.matmul %23, %24, %cst_16 {dimension_numbers = #tpu.dot_dimension_numbers<[2], [2], [1], [1], [0, 0, 0, 1, 1, 1], [0], [0]>} : vector<8x8x8xbf16>, vector<8x8x8xbf16>, vector<8x8x8xf32> -> vector<8x8x8xf32>
    "tpu.trace_stop"() : () -> ()
    %cst_17 = arith.constant dense<0xFF800000> : vector<8x8xf32>
    %26 = vector.multi_reduction <maximumf>, %25, %cst_17 [2] : vector<8x8x8xf32> to vector<8x8xf32>
    %27 = vector.shape_cast %26 : vector<8x8xf32> to vector<8x8x1xf32>
    %28 = vector.broadcast %27 : vector<8x8x1xf32> to vector<8x8x8xf32>
    %29 = arith.subf %25, %28 : vector<8x8x8xf32>
    %30 = math.exp %29 : vector<8x8x8xf32>
    %cst_18 = arith.constant dense<0.000000e+00> : vector<8x8xf32>
    %31 = vector.multi_reduction <add>, %30, %cst_18 [2] : vector<8x8x8xf32> to vector<8x8xf32>
    %32 = vector.shape_cast %31 : vector<8x8xf32> to vector<8x8x1xf32>
    %33 = tpu.reciprocal %32 {approx = true} : vector<8x8x1xf32> -> vector<8x8x1xf32>
    %34 = vector.broadcast %33 : vector<8x8x1xf32> to vector<8x8x8xf32>
    %35 = arith.mulf %30, %34 : vector<8x8x8xf32>
    %36 = arith.truncf %35 : vector<8x8x8xf32> to vector<8x8x8xbf16>
    %37 = arith.truncf %22 : vector<8x8x8xf32> to vector<8x8x8xbf16>
    "tpu.trace_start"() <{level = 10 : i32, message = "nst,ntd->nsd"}> : () -> ()
    %cst_19 = arith.constant dense<0.000000e+00> : vector<8x8x8xf32>
    %38 = tpu.matmul %36, %37, %cst_19 {dimension_numbers = #tpu.dot_dimension_numbers<[2], [1], [1], [2], [0, 0, 0, 1, 1, 2], [0], [0]>} : vector<8x8x8xbf16>, vector<8x8x8xbf16>, vector<8x8x8xf32> -> vector<8x8x8xf32>
    "tpu.trace_stop"() : () -> ()
    %39 = vector.shape_cast %38 : vector<8x8x8xf32> to vector<4x16x8xf32>
    %40 = tpu.transpose %39, [1, 0, 2] : vector<4x16x8xf32> -> vector<16x4x8xf32>
    %41 = vector.shape_cast %40 : vector<16x4x8xf32> to vector<16x32xf32>
    %42 = arith.truncf %41 : vector<16x32xf32> to vector<16x32xbf16>
    %cst_20 = arith.constant dense<0.000000e+00> : vector<16x32xf32>
    %43 = tpu.matmul %42, %5, %cst_20 {dimension_numbers = #tpu.dot_dimension_numbers<[1], [0], [0], [1], [0, 0, 1, 1], [], []>} : vector<16x32xbf16>, vector<32x32xbf16>, vector<16x32xf32> -> vector<16x32xf32>
    %44 = vector.extract_strided_slice %11 {offsets = [1, 0], sizes = [1, 32], strides = [1, 1]} : vector<8x128xf32> to vector<1x32xf32>
    %45 = vector.broadcast %44 : vector<1x32xf32> to vector<16x32xf32>
    %46 = arith.addf %43, %45 : vector<16x32xf32>
    %47 = arith.addf %46, %1 : vector<16x32xf32>
    %48 = vector.extract_strided_slice %11 {offsets = [2, 0], sizes = [1, 32], strides = [1, 1]} : vector<8x128xf32> to vector<1x32xf32>
    %49 = vector.extract_strided_slice %11 {offsets = [3, 0], sizes = [1, 32], strides = [1, 1]} : vector<8x128xf32> to vector<1x32xf32>
    %cst_21 = arith.constant dense<0.000000e+00> : vector<16xf32>
    %50 = vector.multi_reduction <add>, %47, %cst_21 [1] : vector<16x32xf32> to vector<16xf32>
    %51 = vector.shape_cast %50 : vector<16xf32> to vector<16x1xf32>
    %cst_22 = arith.constant 3.200000e+01 : f32
    %52 = vector.broadcast %cst_22 : f32 to vector<16x1xf32>
    %53 = arith.divf %51, %52 : vector<16x1xf32>
    %54 = vector.broadcast %53 : vector<16x1xf32> to vector<16x32xf32>
    %55 = arith.subf %47, %54 : vector<16x32xf32>
    %56 = arith.mulf %55, %55 : vector<16x32xf32>
    %cst_23 = arith.constant dense<0.000000e+00> : vector<16xf32>
    %57 = vector.multi_reduction <add>, %56, %cst_23 [1] : vector<16x32xf32> to vector<16xf32>
    %58 = vector.shape_cast %57 : vector<16xf32> to vector<16x1xf32>
    %cst_24 = arith.constant 3.200000e+01 : f32
    %59 = vector.broadcast %cst_24 : f32 to vector<16x1xf32>
    %60 = arith.divf %58, %59 : vector<16x1xf32>
    %61 = vector.broadcast %53 : vector<16x1xf32> to vector<16x32xf32>
    %62 = arith.subf %47, %61 : vector<16x32xf32>
    %cst_25 = arith.constant 9.99999974E-6 : f32
    %63 = vector.broadcast %cst_25 : f32 to vector<16x1xf32>
    %64 = arith.addf %60, %63 : vector<16x1xf32>
    %65 = math.rsqrt %64 : vector<16x1xf32>
    %66 = vector.broadcast %65 : vector<16x1xf32> to vector<16x32xf32>
    %67 = arith.mulf %62, %66 : vector<16x32xf32>
    %68 = vector.broadcast %48 : vector<1x32xf32> to vector<16x32xf32>
    %69 = arith.mulf %67, %68 : vector<16x32xf32>
    %70 = vector.broadcast %49 : vector<1x32xf32> to vector<16x32xf32>
    %71 = arith.addf %69, %70 : vector<16x32xf32>
    %72 = arith.truncf %71 : vector<16x32xf32> to vector<16x32xbf16>
    %cst_26 = arith.constant dense<0.000000e+00> : vector<16x64xf32>
    %73 = tpu.matmul %72, %7, %cst_26 {dimension_numbers = #tpu.dot_dimension_numbers<[1], [0], [0], [1], [0, 0, 1, 1], [], []>} : vector<16x32xbf16>, vector<32x64xbf16>, vector<16x64xf32> -> vector<16x64xf32>
    %74 = vector.extract_strided_slice %11 {offsets = [4, 0], sizes = [1, 64], strides = [1, 1]} : vector<8x128xf32> to vector<1x64xf32>
    %75 = vector.broadcast %74 : vector<1x64xf32> to vector<16x64xf32>
    %76 = arith.addf %73, %75 : vector<16x64xf32>
    %cst_27 = arith.constant 0.000000e+00 : f32
    %77 = vector.broadcast %cst_27 : f32 to vector<16x64xf32>
    %78 = arith.maximumf %76, %77 : vector<16x64xf32>
    %79 = arith.truncf %78 : vector<16x64xf32> to vector<16x64xbf16>
    %cst_28 = arith.constant dense<0.000000e+00> : vector<16x32xf32>
    %80 = tpu.matmul %79, %9, %cst_28 {dimension_numbers = #tpu.dot_dimension_numbers<[1], [0], [0], [1], [0, 0, 1, 1], [], []>} : vector<16x64xbf16>, vector<64x32xbf16>, vector<16x32xf32> -> vector<16x32xf32>
    %81 = vector.extract_strided_slice %11 {offsets = [5, 0], sizes = [1, 32], strides = [1, 1]} : vector<8x128xf32> to vector<1x32xf32>
    %82 = vector.broadcast %81 : vector<1x32xf32> to vector<16x32xf32>
    %83 = arith.addf %80, %82 : vector<16x32xf32>
    %84 = arith.addf %83, %71 : vector<16x32xf32>
    %85 = vector.extract_strided_slice %11 {offsets = [6, 0], sizes = [1, 32], strides = [1, 1]} : vector<8x128xf32> to vector<1x32xf32>
    %86 = vector.extract_strided_slice %11 {offsets = [7, 0], sizes = [1, 32], strides = [1, 1]} : vector<8x128xf32> to vector<1x32xf32>
    %cst_29 = arith.constant dense<0.000000e+00> : vector<16xf32>
    %87 = vector.multi_reduction <add>, %84, %cst_29 [1] : vector<16x32xf32> to vector<16xf32>
    %88 = vector.shape_cast %87 : vector<16xf32> to vector<16x1xf32>
    %cst_30 = arith.constant 3.200000e+01 : f32
    %89 = vector.broadcast %cst_30 : f32 to vector<16x1xf32>
    %90 = arith.divf %88, %89 : vector<16x1xf32>
    %91 = vector.broadcast %90 : vector<16x1xf32> to vector<16x32xf32>
    %92 = arith.subf %84, %91 : vector<16x32xf32>
    %93 = arith.mulf %92, %92 : vector<16x32xf32>
    %cst_31 = arith.constant dense<0.000000e+00> : vector<16xf32>
    %94 = vector.multi_reduction <add>, %93, %cst_31 [1] : vector<16x32xf32> to vector<16xf32>
    %95 = vector.shape_cast %94 : vector<16xf32> to vector<16x1xf32>
    %cst_32 = arith.constant 3.200000e+01 : f32
    %96 = vector.broadcast %cst_32 : f32 to vector<16x1xf32>
    %97 = arith.divf %95, %96 : vector<16x1xf32>
    %98 = vector.broadcast %90 : vector<16x1xf32> to vector<16x32xf32>
    %99 = arith.subf %84, %98 : vector<16x32xf32>
    %cst_33 = arith.constant 9.99999974E-6 : f32
    %100 = vector.broadcast %cst_33 : f32 to vector<16x1xf32>
    %101 = arith.addf %97, %100 : vector<16x1xf32>
    %102 = math.rsqrt %101 : vector<16x1xf32>
    %103 = vector.broadcast %102 : vector<16x1xf32> to vector<16x32xf32>
    %104 = arith.mulf %99, %103 : vector<16x32xf32>
    %105 = vector.broadcast %85 : vector<1x32xf32> to vector<16x32xf32>
    %106 = arith.mulf %104, %105 : vector<16x32xf32>
    %107 = vector.broadcast %86 : vector<1x32xf32> to vector<16x32xf32>
    %108 = arith.addf %106, %107 : vector<16x32xf32>
    %c1 = arith.constant 1 : index
    %c0_34 = arith.constant 0 : index
    %c0_35 = arith.constant 0 : index
    %109 = vector.load %arg1[%c1, %c0_34, %c0_35] : memref<2x32x96xbf16, #tpu.memory_space<vmem>>, vector<1x32x96xbf16>
    %110 = vector.shape_cast %109 : vector<1x32x96xbf16> to vector<32x96xbf16>
    %c1_36 = arith.constant 1 : index
    %c0_37 = arith.constant 0 : index
    %c0_38 = arith.constant 0 : index
    %111 = vector.load %arg2[%c1_36, %c0_37, %c0_38] : memref<2x32x32xbf16, #tpu.memory_space<vmem>>, vector<1x32x32xbf16>
    %112 = vector.shape_cast %111 : vector<1x32x32xbf16> to vector<32x32xbf16>
    %c1_39 = arith.constant 1 : index
    %c0_40 = arith.constant 0 : index
    %c0_41 = arith.constant 0 : index
    %113 = vector.load %arg3[%c1_39, %c0_40, %c0_41] : memref<2x32x64xbf16, #tpu.memory_space<vmem>>, vector<1x32x64xbf16>
    %114 = vector.shape_cast %113 : vector<1x32x64xbf16> to vector<32x64xbf16>
    %c1_42 = arith.constant 1 : index
    %c0_43 = arith.constant 0 : index
    %c0_44 = arith.constant 0 : index
    %115 = vector.load %arg4[%c1_42, %c0_43, %c0_44] : memref<2x64x32xbf16, #tpu.memory_space<vmem>>, vector<1x64x32xbf16>
    %116 = vector.shape_cast %115 : vector<1x64x32xbf16> to vector<64x32xbf16>
    %117 = vector.extract_strided_slice %0 {offsets = [1, 0, 0], sizes = [1, 8, 128], strides = [1, 1, 1]} : vector<2x8x128xf32> to vector<1x8x128xf32>
    %118 = vector.shape_cast %117 : vector<1x8x128xf32> to vector<8x128xf32>
    %119 = arith.truncf %108 : vector<16x32xf32> to vector<16x32xbf16>
    %cst_45 = arith.constant dense<0.000000e+00> : vector<16x96xf32>
    %120 = tpu.matmul %119, %110, %cst_45 {dimension_numbers = #tpu.dot_dimension_numbers<[1], [0], [0], [1], [0, 0, 1, 1], [], []>} : vector<16x32xbf16>, vector<32x96xbf16>, vector<16x96xf32> -> vector<16x96xf32>
    %121 = vector.extract_strided_slice %118 {offsets = [0, 0], sizes = [1, 96], strides = [1, 1]} : vector<8x128xf32> to vector<1x96xf32>
    %122 = vector.broadcast %121 : vector<1x96xf32> to vector<16x96xf32>
    %123 = arith.addf %120, %122 : vector<16x96xf32>
    %124 = vector.shape_cast %123 : vector<16x96xf32> to vector<16x12x8xf32>
    %125 = tpu.transpose %124, [1, 0, 2] : vector<16x12x8xf32> -> vector<12x16x8xf32>
    %126 = vector.shape_cast %125 : vector<12x16x8xf32> to vector<24x8x8xf32>
    %127 = vector.extract_strided_slice %126 {offsets = [0, 0, 0], sizes = [8, 8, 8], strides = [1, 1, 1]} : vector<24x8x8xf32> to vector<8x8x8xf32>
    %128 = vector.extract_strided_slice %126 {offsets = [8, 0, 0], sizes = [8, 8, 8], strides = [1, 1, 1]} : vector<24x8x8xf32> to vector<8x8x8xf32>
    %129 = vector.extract_strided_slice %126 {offsets = [16, 0, 0], sizes = [8, 8, 8], strides = [1, 1, 1]} : vector<24x8x8xf32> to vector<8x8x8xf32>
    %130 = arith.truncf %127 : vector<8x8x8xf32> to vector<8x8x8xbf16>
    %131 = arith.truncf %128 : vector<8x8x8xf32> to vector<8x8x8xbf16>
    "tpu.trace_start"() <{level = 10 : i32, message = "nsd,ntd->nst"}> : () -> ()
    %cst_46 = arith.constant dense<0.000000e+00> : vector<8x8x8xf32>
    %132 = tpu.matmul %130, %131, %cst_46 {dimension_numbers = #tpu.dot_dimension_numbers<[2], [2], [1], [1], [0, 0, 0, 1, 1, 1], [0], [0]>} : vector<8x8x8xbf16>, vector<8x8x8xbf16>, vector<8x8x8xf32> -> vector<8x8x8xf32>
    "tpu.trace_stop"() : () -> ()
    %cst_47 = arith.constant dense<0xFF800000> : vector<8x8xf32>
    %133 = vector.multi_reduction <maximumf>, %132, %cst_47 [2] : vector<8x8x8xf32> to vector<8x8xf32>
    %134 = vector.shape_cast %133 : vector<8x8xf32> to vector<8x8x1xf32>
    %135 = vector.broadcast %134 : vector<8x8x1xf32> to vector<8x8x8xf32>
    %136 = arith.subf %132, %135 : vector<8x8x8xf32>
    %137 = math.exp %136 : vector<8x8x8xf32>
    %cst_48 = arith.constant dense<0.000000e+00> : vector<8x8xf32>
    %138 = vector.multi_reduction <add>, %137, %cst_48 [2] : vector<8x8x8xf32> to vector<8x8xf32>
    %139 = vector.shape_cast %138 : vector<8x8xf32> to vector<8x8x1xf32>
    %140 = tpu.reciprocal %139 {approx = true} : vector<8x8x1xf32> -> vector<8x8x1xf32>
    %141 = vector.broadcast %140 : vector<8x8x1xf32> to vector<8x8x8xf32>
    %142 = arith.mulf %137, %141 : vector<8x8x8xf32>
    %143 = arith.truncf %142 : vector<8x8x8xf32> to vector<8x8x8xbf16>
    %144 = arith.truncf %129 : vector<8x8x8xf32> to vector<8x8x8xbf16>
    "tpu.trace_start"() <{level = 10 : i32, message = "nst,ntd->nsd"}> : () -> ()
    %cst_49 = arith.constant dense<0.000000e+00> : vector<8x8x8xf32>
    %145 = tpu.matmul %143, %144, %cst_49 {dimension_numbers = #tpu.dot_dimension_numbers<[2], [1], [1], [2], [0, 0, 0, 1, 1, 2], [0], [0]>} : vector<8x8x8xbf16>, vector<8x8x8xbf16>, vector<8x8x8xf32> -> vector<8x8x8xf32>
    "tpu.trace_stop"() : () -> ()
    %146 = vector.shape_cast %145 : vector<8x8x8xf32> to vector<4x16x8xf32>
    %147 = tpu.transpose %146, [1, 0, 2] : vector<4x16x8xf32> -> vector<16x4x8xf32>
    %148 = vector.shape_cast %147 : vector<16x4x8xf32> to vector<16x32xf32>
    %149 = arith.truncf %148 : vector<16x32xf32> to vector<16x32xbf16>
    %cst_50 = arith.constant dense<0.000000e+00> : vector<16x32xf32>
    %150 = tpu.matmul %149, %112, %cst_50 {dimension_numbers = #tpu.dot_dimension_numbers<[1], [0], [0], [1], [0, 0, 1, 1], [], []>} : vector<16x32xbf16>, vector<32x32xbf16>, vector<16x32xf32> -> vector<16x32xf32>
    %151 = vector.extract_strided_slice %118 {offsets = [1, 0], sizes = [1, 32], strides = [1, 1]} : vector<8x128xf32> to vector<1x32xf32>
    %152 = vector.broadcast %151 : vector<1x32xf32> to vector<16x32xf32>
    %153 = arith.addf %150, %152 : vector<16x32xf32>
    %154 = arith.addf %153, %108 : vector<16x32xf32>
    %155 = vector.extract_strided_slice %118 {offsets = [2, 0], sizes = [1, 32], strides = [1, 1]} : vector<8x128xf32> to vector<1x32xf32>
    %156 = vector.extract_strided_slice %118 {offsets = [3, 0], sizes = [1, 32], strides = [1, 1]} : vector<8x128xf32> to vector<1x32xf32>
    %cst_51 = arith.constant dense<0.000000e+00> : vector<16xf32>
    %157 = vector.multi_reduction <add>, %154, %cst_51 [1] : vector<16x32xf32> to vector<16xf32>
    %158 = vector.shape_cast %157 : vector<16xf32> to vector<16x1xf32>
    %cst_52 = arith.constant 3.200000e+01 : f32
    %159 = vector.broadcast %cst_52 : f32 to vector<16x1xf32>
    %160 = arith.divf %158, %159 : vector<16x1xf32>
    %161 = vector.broadcast %160 : vector<16x1xf32> to vector<16x32xf32>
    %162 = arith.subf %154, %161 : vector<16x32xf32>
    %163 = arith.mulf %162, %162 : vector<16x32xf32>
    %cst_53 = arith.constant dense<0.000000e+00> : vector<16xf32>
    %164 = vector.multi_reduction <add>, %163, %cst_53 [1] : vector<16x32xf32> to vector<16xf32>
    %165 = vector.shape_cast %164 : vector<16xf32> to vector<16x1xf32>
    %cst_54 = arith.constant 3.200000e+01 : f32
    %166 = vector.broadcast %cst_54 : f32 to vector<16x1xf32>
    %167 = arith.divf %165, %166 : vector<16x1xf32>
    %168 = vector.broadcast %160 : vector<16x1xf32> to vector<16x32xf32>
    %169 = arith.subf %154, %168 : vector<16x32xf32>
    %cst_55 = arith.constant 9.99999974E-6 : f32
    %170 = vector.broadcast %cst_55 : f32 to vector<16x1xf32>
    %171 = arith.addf %167, %170 : vector<16x1xf32>
    %172 = math.rsqrt %171 : vector<16x1xf32>
    %173 = vector.broadcast %172 : vector<16x1xf32> to vector<16x32xf32>
    %174 = arith.mulf %169, %173 : vector<16x32xf32>
    %175 = vector.broadcast %155 : vector<1x32xf32> to vector<16x32xf32>
    %176 = arith.mulf %174, %175 : vector<16x32xf32>
    %177 = vector.broadcast %156 : vector<1x32xf32> to vector<16x32xf32>
    %178 = arith.addf %176, %177 : vector<16x32xf32>
    %179 = arith.truncf %178 : vector<16x32xf32> to vector<16x32xbf16>
    %cst_56 = arith.constant dense<0.000000e+00> : vector<16x64xf32>
    %180 = tpu.matmul %179, %114, %cst_56 {dimension_numbers = #tpu.dot_dimension_numbers<[1], [0], [0], [1], [0, 0, 1, 1], [], []>} : vector<16x32xbf16>, vector<32x64xbf16>, vector<16x64xf32> -> vector<16x64xf32>
    %181 = vector.extract_strided_slice %118 {offsets = [4, 0], sizes = [1, 64], strides = [1, 1]} : vector<8x128xf32> to vector<1x64xf32>
    %182 = vector.broadcast %181 : vector<1x64xf32> to vector<16x64xf32>
    %183 = arith.addf %180, %182 : vector<16x64xf32>
    %cst_57 = arith.constant 0.000000e+00 : f32
    %184 = vector.broadcast %cst_57 : f32 to vector<16x64xf32>
    %185 = arith.maximumf %183, %184 : vector<16x64xf32>
    %186 = arith.truncf %185 : vector<16x64xf32> to vector<16x64xbf16>
    %cst_58 = arith.constant dense<0.000000e+00> : vector<16x32xf32>
    %187 = tpu.matmul %186, %116, %cst_58 {dimension_numbers = #tpu.dot_dimension_numbers<[1], [0], [0], [1], [0, 0, 1, 1], [], []>} : vector<16x64xbf16>, vector<64x32xbf16>, vector<16x32xf32> -> vector<16x32xf32>
    %188 = vector.extract_strided_slice %118 {offsets = [5, 0], sizes = [1, 32], strides = [1, 1]} : vector<8x128xf32> to vector<1x32xf32>
    %189 = vector.broadcast %188 : vector<1x32xf32> to vector<16x32xf32>
    %190 = arith.addf %187, %189 : vector<16x32xf32>
    %191 = arith.addf %190, %178 : vector<16x32xf32>
    %192 = vector.extract_strided_slice %118 {offsets = [6, 0], sizes = [1, 32], strides = [1, 1]} : vector<8x128xf32> to vector<1x32xf32>
    %193 = vector.extract_strided_slice %118 {offsets = [7, 0], sizes = [1, 32], strides = [1, 1]} : vector<8x128xf32> to vector<1x32xf32>
    %cst_59 = arith.constant dense<0.000000e+00> : vector<16xf32>
    %194 = vector.multi_reduction <add>, %191, %cst_59 [1] : vector<16x32xf32> to vector<16xf32>
    %195 = vector.shape_cast %194 : vector<16xf32> to vector<16x1xf32>
    %cst_60 = arith.constant 3.200000e+01 : f32
    %196 = vector.broadcast %cst_60 : f32 to vector<16x1xf32>
    %197 = arith.divf %195, %196 : vector<16x1xf32>
    %198 = vector.broadcast %197 : vector<16x1xf32> to vector<16x32xf32>
    %199 = arith.subf %191, %198 : vector<16x32xf32>
    %200 = arith.mulf %199, %199 : vector<16x32xf32>
    %cst_61 = arith.constant dense<0.000000e+00> : vector<16xf32>
    %201 = vector.multi_reduction <add>, %200, %cst_61 [1] : vector<16x32xf32> to vector<16xf32>
    %202 = vector.shape_cast %201 : vector<16xf32> to vector<16x1xf32>
    %cst_62 = arith.constant 3.200000e+01 : f32
    %203 = vector.broadcast %cst_62 : f32 to vector<16x1xf32>
    %204 = arith.divf %202, %203 : vector<16x1xf32>
    %205 = vector.broadcast %197 : vector<16x1xf32> to vector<16x32xf32>
    %206 = arith.subf %191, %205 : vector<16x32xf32>
    %cst_63 = arith.constant 9.99999974E-6 : f32
    %207 = vector.broadcast %cst_63 : f32 to vector<16x1xf32>
    %208 = arith.addf %204, %207 : vector<16x1xf32>
    %209 = math.rsqrt %208 : vector<16x1xf32>
    %210 = vector.broadcast %209 : vector<16x1xf32> to vector<16x32xf32>
    %211 = arith.mulf %206, %210 : vector<16x32xf32>
    %212 = vector.broadcast %192 : vector<1x32xf32> to vector<16x32xf32>
    %213 = arith.mulf %211, %212 : vector<16x32xf32>
    %214 = vector.broadcast %193 : vector<1x32xf32> to vector<16x32xf32>
    %215 = arith.addf %213, %214 : vector<16x32xf32>
    %c0_64 = arith.constant 0 : index
    %c0_65 = arith.constant 0 : index
    %216 = vector.load %arg6[%c0_64, %c0_65] : memref<16x32xf32, #tpu.memory_space<vmem>>, vector<16x32xf32>
    tpu.vector_store %arg6[%c0_64, %c0_65], %215 {strides = array<i32>} : memref<16x32xf32, #tpu.memory_space<vmem>>, vector<16x32xf32>,
    return
  }
}

</mosaic_0001>

<bundles_post_ra>
// kernel: tpu_custom_call.1
= control target key start
LH: loop header
LB: loop body
LE: loop exit
PB: predicated region body
PF: predicated region fallthrough
CT: control target
= control target key end

     0   :  { %11 = vsyncpa [#allocation3], 0  ;;  %s6667_s0 = inlined_call_operand.hbm [shape: f32[16,32], index: 0, kind: input, shape index: {}]   ;;  %s6668_s1 = inlined_call_operand.vmem [shape: bf16[2,32,96], index: 1, kind: input, shape index: {}]   ;;  %s6669_s2 = inlined_call_operand.vmem [shape: bf16[2,32,32], index: 2, kind: input, shape index: {}]   ;;  %s6670_s3 = inlined_call_operand.vmem [shape: bf16[2,32,64], index: 3, kind: input, shape index: {}]   ;;  %s6671_s4 = inlined_call_operand.vmem [shape: bf16[2,64,32], index: 4, kind: input, shape index: {}]   ;;  %s6672_s5 = inlined_call_operand.hbm [shape: f32[2,8,128], index: 5, kind: input, shape index: {}]   ;;  %s6673_s6 = inlined_call_operand.hbm [shape: f32[16,32], index: 6, kind: output, shape index: {}]  }
   0x1   :  { %12 = vsyncpa [#allocation6], 0 }
   0x2   :  { %13 = vsyncpa [#allocation4], 0  ;;  %s5594_s21 = smov [#allocation2]  }
   0x3   :  { %s19_s22 = sshll.u32 %s5594_s21, 4  ;;  %s20_s22 = int_to_ptr.vmem [resolvable:$true] %s19_s22 }
   0x4   :  { %s5536_s23 = scalar_lea.vmem %s20_s22, 256  ;;  %p5541_p1 = scmp.lt.s32.totalorder %s20_s22, %s20_s22 }
   0x5   :  { %p5537_p0 = scmp.ne.s32.totalorder %s20_s22, %s5536_s23  ;;  %p5542_p2 = scmp.lt.s32.totalorder %s5536_s23, %s5536_s23 }
   0x7   :  { %p5543_p3 = por %p5542_p2, %p5541_p1 }
   0x9   :  { %p5544_p4 = pnand %p5543_p3, %p5537_p0 }
   0xb   :  { %5547 = shalt.err (!%p5544_p4)
}
   0xc   :  { %s5595_s24 = smov 128   ;;  %s5596_s25 = smov 8  }
   0xd   :  { %25 = dma.hbm_to_vmem [thread:$0]  %s6667_s0, 256, %s20_s22, [#allocation3], %s5595_s24, %s5595_s24, %s5596_s25  }
   0xe   :  { %s5597_s28 = smov [#allocation5]  }
   0xf   :  { %s39_s29 = sshll.u32 %s5597_s28, 4  ;;  %s40_s29 = int_to_ptr.vmem [resolvable:$true] %s39_s29 }
  0x10   :  { %s5556_s30 = scalar_lea.vmem %s40_s29, 256  ;;  %p5561_p6 = scmp.lt.s32.totalorder %s40_s29, %s40_s29 }
  0x11   :  { %p5557_p5 = scmp.ne.s32.totalorder %s40_s29, %s5556_s30  ;;  %p5562_p7 = scmp.lt.s32.totalorder %s5556_s30, %s5556_s30 }
  0x13   :  { %p5563_p8 = por %p5562_p7, %p5561_p6 }
  0x15   :  { %p5564_p9 = pnand %p5563_p8, %p5557_p5 }
  0x17   :  { %5567 = shalt.err (!%p5564_p9)
}
  0x18   :  { %45 = dma.hbm_to_vmem [thread:$0]  %s6672_s5, 256, %s40_s29, [#allocation6], %s5595_s24, %s5595_s24, %s5596_s25  }
  0x19   :  { %5588 = dma.done.wait [#allocation3], 256  }
  0x1a   :  { %5589 = vsyncadd [#allocation3], 4294967040 }
  0x1b   :  { %5590 = dma.done.wait [#allocation6], 256  }
  0x1c   :  { %5591 = vsyncadd [#allocation6], 4294967040  ;;  %v5598_v0 = vmov 0.0   ;;  %vm5599_vm0 = vmmov 0   ;;  %v5424_v1 = vld [vmem:[%s6668_s1 + $0x8] sm:$0xff]   ;;  %v5425_v2 = vld [vmem:[%s6668_s1] sm:$0xff]   ;;  %v78_v6 = vlaneseq }
  0x1d   :  { %5108 = vmatprep.subr.bf16.mxu1 %v5598_v0  ;;  %5112 = vmatprep.mubr.msk.bf16.mxu1 %vm5599_vm0, %v5598_v0  ;;  %v55_v3 = vld [vmem:[#allocation2] sm:$0xff]  ;;  %v56_v4 = vld [vmem:[#allocation2 + $0x8] sm:$0xff]  ;;  %vm94_vm1 = vcmask 261120   ;;  %v53_v9 = vld [vmem:[#allocation5] sm:$0xff]  ;;  %s5600_s11 = smov 88   ;;  %s5601_s12 = smov 96  }
  0x1e   :  { %5122 = vmatprep.subr.bf16.mxu0 %v5598_v0  ;;  %5124 = vmatprep.mubr.msk.bf16.mxu0 %vm5599_vm0, %v5598_v0  ;;  %v77_v5 = vpack.c.bf16 %v56_v4, %v55_v3  ;;  %v5680_v7 = vshrl.u32 %v78_v6, 7  ;;  %s5602_s13 = smov 80   ;;  %s5603_s14 = smov 72   ;;  %v5609_v17 = vmov 1983009808   ;;  %vm1039_vm2 = vcmask 64512  }
  0x1f   :  { %5109 = vmatpush3.bf16.msra.mxu1 %v5424_v1  ;;  %s5604_s15 = smov 120   ;;  %s5605_s16 = smov 112   ;;  %v210_v18 = vunpack.c.l.s4 %v5609_v17  ;;  %v5610_v21 = vmov 1934713408   ;;  %vm1515_vm3 = vcmask 1043456   ;;  %vm2179_vm4 = vcmask 130048  }
  0x20   :  { %5110 = vmatprep.subr.bf16.mxu1 %v5598_v0  ;;  %v80_v8 = vsub.s32 0, %v5680_v7  ;;  %s5606_s17 = smov 104   ;;  %s5607_s18 = smov 64   ;;  %v274_v22 = vunpack.c.l.s4 %v5610_v21  ;;  %vm2182_vm5 = vcmask 195584   ;;  %vm2379_vm6 = vcmask 523264  }
  0x21   :  { %s5608_s19 = smov 56   ;;  %v211_v23 = vunpack.c.0.s8 %v210_v18  ;;  %s5611_s20 = smov 48  }
  0x22   :  { %v81_v10 = vrot.slane %v53_v9, %v80_v8  ;;  %v275_v26 = vunpack.c.0.s8 %v274_v22  ;;  %s5612_s21 = smov 40   ;;  %s5613_s28 = smov 16  }
  0x23   :  { %5111 = vmatpush3.bf16.msra.mxu1 %v5425_v2  ;;  %v5726_v27 = vsub.s32 %v211_v23, %v5680_v7  ;;  %s5614_s29 = smov 24  }
  0x24   :  { %5116 = vmatprep.subr.bf16.mxu1 %v5598_v0  ;;  %v5729_v34 = vsub.s32 %v275_v26, %v5680_v7 }
  0x26   :  { %5113 = vmatmul.mubr.msk.bf16.vlgmr.msra.gmra.mxu1 %vm94_vm1, %v77_v5 }
  0x27   :  { %5118 = vmatprep.mubr.msk.bf16.mxu1 %vm5599_vm0, %v5598_v0 }
  0xe6   :  { %v132_v11 = vpop.f32.mrf.mxu1 }
  0xe7   :  { %v5685_v12 = vadd.f32 %v132_v11, %v81_v10 }
  0xe8   :  { %v5114_v13 = vpop.f32.mrf.mxu1 }
  0xe9   :  { %165 = vrot.lane.b32.xlu1 %v5685_v12, %s5600_s11  ;;  %159 = vrot.lane.b32.xlu0 %v5685_v12, %s5601_s12 }
  0xea   :  { %v135_v14 = vpop.f32.mrf.mxu1 }
  0xeb   :  { %v5691_v15 = vadd.f32 %v135_v14, %v81_v10 }
  0xec   :  { %v5115_v16 = vpop.f32.mrf.mxu1 }
  0xed   :  { %167 = vrot.lane.b32.xlu1 %v5691_v15, %s5600_s11  ;;  %171 = vrot.lane.b32.xlu0 %v5685_v12, %s5602_s13 }
  0xf1   :  { %173 = vrot.lane.b32.xlu1 %v5691_v15, %s5602_s13  ;;  %177 = vrot.lane.b32.xlu0 %v5685_v12, %s5603_s14 }
  0xf5   :  { %179 = vrot.lane.b32.xlu1 %v5691_v15, %s5603_s14  ;;  %141 = vrot.lane.b32.xlu0 %v5685_v12, %s5604_s15 }
  0xf9   :  { %143 = vrot.lane.b32.xlu1 %v5691_v15, %s5604_s15  ;;  %161 = vrot.lane.b32.xlu0 %v5691_v15, %s5601_s12 }
  0xfd   :  { %149 = vrot.lane.b32.xlu1 %v5691_v15, %s5605_s16  ;;  %147 = vrot.lane.b32.xlu0 %v5685_v12, %s5605_s16 }
 0x101   :  { %155 = vrot.lane.b32.xlu1 %v5691_v15, %s5606_s17  ;;  %153 = vrot.lane.b32.xlu0 %v5685_v12, %s5606_s17 }
 0x105   :  { %183 = vrot.lane.b32.xlu1 %v5685_v12, %s5607_s18  ;;  %185 = vrot.lane.b32.xlu0 %v5691_v15, %s5607_s18 }
 0x109   :  { %189 = vrot.lane.b32.xlu1 %v5685_v12, %s5608_s19 }
 0x10d   :  { %191 = vrot.lane.b32.xlu1 %v5691_v15, %s5608_s19 }
 0x15b   :  { %v166_v19 = vpop.permute.xlu1 %165  ;;  %v160_v20 = vpop.permute.xlu0 %159 }
 0x15f   :  { %v168_v24 = vpop.permute.xlu1 %167  ;;  %v172_v25 = vpop.permute.xlu0 %171 }
 0x160   :  { %v239_v28 = vcombine.low %v160_v20, %v172_v25  ;;  %v240_v29 = vcombine.high %v160_v20, %v172_v25 }
 0x162   :  { %v247_v35 = vrot.slane %v239_v28, %v5726_v27  ;;  %v254_v36 = vrot.slane %v240_v29, %v5726_v27 }
 0x163   :  { %v174_v30 = vpop.permute.xlu1 %173  ;;  %v178_v31 = vpop.permute.xlu0 %177 }
 0x164   :  { %v255_v32 = vcombine.low %v166_v19, %v178_v31  ;;  %v256_v33 = vcombine.high %v166_v19, %v178_v31 }
 0x166   :  { %v263_v37 = vrot.slane %v255_v32, %v5726_v27  ;;  %v270_v38 = vrot.slane %v256_v33, %v5726_v27 }
 0x167   :  { %v180_v39 = vpop.permute.xlu1 %179  ;;  %v142_v40 = vpop.permute.xlu0 %141 }
 0x168   :  { %v303_v41 = vcombine.low %v247_v35, %v263_v37  ;;  %v304_v42 = vcombine.high %v247_v35, %v263_v37  ;;  %v319_v43 = vcombine.low %v254_v36, %v270_v38  ;;  %v320_v44 = vcombine.high %v254_v36, %v270_v38 }
 0x169   :  { %v459_v45 = vcombine.low %v168_v24, %v180_v39  ;;  %v460_v46 = vcombine.high %v168_v24, %v180_v39 }
 0x16a   :  { %v311_v47 = vrot.slane %v303_v41, %v5729_v34  ;;  %v318_v48 = vrot.slane %v304_v42, %v5729_v34  ;;  %v327_v49 = vrot.slane %v319_v43, %v5729_v34  ;;  %v334_v50 = vrot.slane %v320_v44, %v5729_v34 }
 0x16b   :  { %v144_v51 = vpop.permute.xlu1 %143  ;;  %v162_v52 = vpop.permute.xlu0 %161  ;;  %v467_v61 = vrot.slane %v459_v45, %v5726_v27  ;;  %v474_v62 = vrot.slane %v460_v46, %v5726_v27 }
 0x16c   :  { %v4892_v53 = vcombine.low %v311_v47, %v318_v48  ;;  %v4894_v54 = vcombine.high %v311_v47, %v318_v48  ;;  %v4896_v55 = vcombine.low %v327_v49, %v334_v50  ;;  %v4898_v56 = vcombine.high %v327_v49, %v334_v50 }
 0x16d   :  { %v443_v57 = vcombine.low %v162_v52, %v174_v30  ;;  %v444_v58 = vcombine.high %v162_v52, %v174_v30 }
 0x16e   :  { %v5740_v59 = vrot.slane %v4892_v53, %v5726_v27  ;;  %v5743_v60 = vrot.slane %v4894_v54, %v5726_v27  ;;  %v5748_v63 = vrot.slane %v4896_v55, %v5726_v27  ;;  %v5751_v1 = vrot.slane %v4898_v56, %v5726_v27 }
 0x16f   :  { %v451_v2 = vrot.slane %v443_v57, %v5726_v27  ;;  %v458_v3 = vrot.slane %v444_v58, %v5726_v27  ;;  %v150_v4 = vpop.permute.xlu1 %149  ;;  %v148_v5 = vpop.permute.xlu0 %147 }
 0x170   :  { %v411_v6 = vcombine.low %v5691_v15, %v150_v4  ;;  %v412_v9 = vcombine.high %v5691_v15, %v150_v4  ;;  %v207_v10 = vcombine.low %v5685_v12, %v148_v5  ;;  %v208_v11 = vcombine.high %v5685_v12, %v148_v5 }
 0x171   :  { %v507_v13 = vcombine.low %v451_v2, %v467_v61  ;;  %v508_v14 = vcombine.high %v451_v2, %v467_v61  ;;  %v523_v16 = vcombine.low %v458_v3, %v474_v62  ;;  %v524_v17 = vcombine.high %v458_v3, %v474_v62 }
 0x172   :  { %v419_v18 = vrot.slane %v411_v6, %v5726_v27  ;;  %v426_v19 = vrot.slane %v412_v9, %v5726_v27  ;;  %v215_v20 = vrot.slane %v207_v10, %v5726_v27  ;;  %v222_v21 = vrot.slane %v208_v11, %v5726_v27 }
 0x173   :  { %v515_v22 = vrot.slane %v507_v13, %v5729_v34  ;;  %v522_v23 = vrot.slane %v508_v14, %v5729_v34  ;;  %v531_v24 = vrot.slane %v523_v16, %v5729_v34  ;;  %v538_v25 = vrot.slane %v524_v17, %v5729_v34  ;;  %v156_v26 = vpop.permute.xlu1 %155  ;;  %v154_v28 = vpop.permute.xlu0 %153 }
 0x174   :  { %v427_v29 = vcombine.low %v144_v51, %v156_v26  ;;  %v428_v30 = vcombine.high %v144_v51, %v156_v26  ;;  %v223_v31 = vcombine.low %v142_v40, %v154_v28  ;;  %v224_v32 = vcombine.high %v142_v40, %v154_v28 }
 0x175   :  { %v4900_v33 = vcombine.low %v515_v22, %v522_v23  ;;  %v4902_v35 = vcombine.high %v515_v22, %v522_v23  ;;  %v4904_v36 = vcombine.low %v531_v24, %v538_v25  ;;  %v4906_v37 = vcombine.high %v531_v24, %v538_v25 }
 0x176   :  { %v435_v38 = vrot.slane %v427_v29, %v5726_v27  ;;  %v442_v39 = vrot.slane %v428_v30, %v5726_v27  ;;  %v231_v41 = vrot.slane %v223_v31, %v5726_v27  ;;  %v238_v42 = vrot.slane %v224_v32, %v5726_v27 }
 0x177   :  { %v695_v43 = vcombine.low %v5740_v59, %v5743_v60  ;;  %v727_v44 = vcombine.low %v5748_v63, %v5751_v1  ;;  %v5776_v40 = vrot.slane %v4900_v33, %v5726_v27  ;;  %v5779_v45 = vrot.slane %v4902_v35, %v5726_v27 }
 0x178   :  { %v475_v46 = vcombine.low %v419_v18, %v435_v38  ;;  %v476_v47 = vcombine.high %v419_v18, %v435_v38  ;;  %v491_v48 = vcombine.low %v426_v19, %v442_v39  ;;  %v492_v49 = vcombine.high %v426_v19, %v442_v39 }
 0x179   :  { %v271_v50 = vcombine.low %v215_v20, %v231_v41  ;;  %v272_v51 = vcombine.high %v215_v20, %v231_v41  ;;  %v287_v52 = vcombine.low %v222_v21, %v238_v42  ;;  %v288_v53 = vcombine.high %v222_v21, %v238_v42 }
 0x17a   :  { %v483_v54 = vrot.slane %v475_v46, %v5729_v34  ;;  %v490_v55 = vrot.slane %v476_v47, %v5729_v34  ;;  %v499_v56 = vrot.slane %v491_v48, %v5729_v34  ;;  %v506_v57 = vrot.slane %v492_v49, %v5729_v34 }
 0x17b   :  { %v279_v58 = vrot.slane %v271_v50, %v5729_v34  ;;  %v286_v61 = vrot.slane %v272_v51, %v5729_v34  ;;  %v295_v62 = vrot.slane %v287_v52, %v5729_v34  ;;  %v302_v2 = vrot.slane %v288_v53, %v5729_v34 }
 0x17c   :  { %v4899_v3 = vcombine.low %v483_v54, %v490_v55  ;;  %v4901_v4 = vcombine.high %v483_v54, %v490_v55  ;;  %v4903_v5 = vcombine.low %v499_v56, %v506_v57  ;;  %v4905_v6 = vcombine.high %v499_v56, %v506_v57 }
 0x17d   :  { %v4891_v9 = vcombine.low %v279_v58, %v286_v61  ;;  %v4893_v10 = vcombine.high %v279_v58, %v286_v61  ;;  %v4895_v11 = vcombine.low %v295_v62, %v302_v2  ;;  %v4897_v13 = vcombine.high %v295_v62, %v302_v2 }
 0x17e   :  { %v5790_v14 = vrot.slane %v4899_v3, %v5726_v27  ;;  %v5793_v16 = vrot.slane %v4901_v4, %v5726_v27  ;;  %v5796_v17 = vrot.slane %v4903_v5, %v5726_v27  ;;  %v5799_v18 = vrot.slane %v4905_v6, %v5726_v27 }
 0x17f   :  { %v623_v19 = vrot.slane %v4891_v9, %v5726_v27  ;;  %v639_v20 = vrot.slane %v4893_v10, %v5726_v27  ;;  %v655_v21 = vrot.slane %v4895_v11, %v5726_v27  ;;  %v671_v22 = vrot.slane %v4897_v13, %v5726_v27 }
 0x180   :  { %v703_v23 = vrot.slane %v695_v43, %v5729_v34  ;;  %v735_v24 = vrot.slane %v727_v44, %v5729_v34  ;;  %v798_v29 = vrot.slane %v4904_v36, %v5726_v27  ;;  %v814_v30 = vrot.slane %v4906_v37, %v5726_v27 }
 0x181   :  { %v679_v25 = vcombine.low %v623_v19, %v639_v20  ;;  %v711_v26 = vcombine.low %v655_v21, %v671_v22  ;;  %v831_v31 = vcombine.low %v5776_v40, %v5779_v45  ;;  %v815_v35 = vcombine.low %v5790_v14, %v5793_v16 }
 0x182   :  { %v747_v28 = vcombine.low %v703_v23, %v735_v24  ;;  %v847_v38 = vcombine.low %v5796_v17, %v5799_v18  ;;  %v863_v42 = vcombine.low %v798_v29, %v814_v30  ;;  %v748_v36 = vcombine.high %v703_v23, %v735_v24 }
 0x183   :  { %v687_v32 = vrot.slane %v679_v25, %v5729_v34  ;;  %v719_v33 = vrot.slane %v711_v26, %v5729_v34  ;;  %v839_v41 = vrot.slane %v831_v31, %v5729_v34  ;;  %v696_v46 = vcombine.high %v5740_v59, %v5743_v60 }
 0x184   :  { %v1031_v39 = vpack.c.bf16 %v747_v28, %v747_v28  ;;  %v871_v43 = vrot.slane %v863_v42, %v5729_v34  ;;  %v823_v47 = vrot.slane %v815_v35, %v5729_v34  ;;  %v855_v48 = vrot.slane %v847_v38, %v5729_v34 }
 0x185   :  { %v743_v44 = vcombine.low %v687_v32, %v719_v33  ;;  %v728_v50 = vcombine.high %v5748_v63, %v5751_v1  ;;  %v1033_v53 = vpack.c.bf16 %v748_v36, %v748_v36  ;;  %v710_v54 = vrot.slane %v696_v46, %v5729_v34 }
 0x186   :  { %v1044_v37 = vsel %vm1039_vm2, %v1031_v39, 0  ;;  %v883_v49 = vcombine.low %v839_v41, %v871_v43  ;;  %v879_v55 = vcombine.low %v823_v47, %v855_v48  ;;  %v884_v60 = vcombine.high %v839_v41, %v871_v43 }
 0x187   :  { %5117 = vmatpush3.bf16.xpose.msra.mxu1 %v1044_v37  ;;  %v1023_v52 = vpack.c.bf16 %v743_v44, %v743_v44  ;;  %v742_v56 = vrot.slane %v728_v50, %v5729_v34  ;;  %v832_v57 = vcombine.high %v5776_v40, %v5779_v45  ;;  %v864_v58 = vcombine.high %v798_v29, %v814_v30 }
 0x188   :  { %5128 = vmatprep.subr.bf16.mxu1 %v5598_v0  ;;  %v1032_v51 = vpack.c.bf16 %v883_v49, %v883_v49  ;;  %v1136_v63 = vsel %vm1039_vm2, %v1033_v53, 0  ;;  %v680_v61 = vcombine.high %v623_v19, %v639_v20  ;;  %v712_v62 = vcombine.high %v655_v21, %v671_v22 }
 0x189   :  { %v749_v1 = vcombine.low %v710_v54, %v742_v56  ;;  %v744_v2 = vcombine.high %v687_v32, %v719_v33  ;;  %v1024_v3 = vpack.c.bf16 %v879_v55, %v879_v55  ;;  %v1034_v4 = vpack.c.bf16 %v884_v60, %v884_v60 }
 0x18a   :  { %v1090_v59 = vsel %vm1039_vm2, %v1032_v51, 0  ;;  %v846_v40 = vrot.slane %v832_v57, %v5729_v34  ;;  %v878_v45 = vrot.slane %v864_v58, %v5729_v34  ;;  %v694_v11 = vrot.slane %v680_v61, %v5729_v34 }
 0x18b   :  { %5123 = vmatpush3.bf16.xpose.msra.mxu0 %v1090_v59  ;;  %v1035_v5 = vpack.c.bf16 %v749_v1, %v749_v1  ;;  %v1025_v6 = vpack.c.bf16 %v744_v2, %v744_v2  ;;  %v1182_v9 = vsel %vm1039_vm2, %v1034_v4, 0  ;;  %v726_v13 = vrot.slane %v712_v62, %v5729_v34 }
 0x18c   :  { %5134 = vmatprep.subr.bf16.mxu0 %v5598_v0  ;;  %v885_v10 = vcombine.low %v846_v40, %v878_v45  ;;  %v816_v19 = vcombine.high %v5790_v14, %v5793_v16  ;;  %v848_v20 = vcombine.high %v5796_v17, %v5799_v18  ;;  %v880_v21 = vcombine.high %v823_v47, %v855_v48 }
 0x18d   :  { %v1228_v22 = vsel %vm1039_vm2, %v1035_v5, 0  ;;  %v750_v23 = vcombine.high %v710_v54, %v742_v56  ;;  %v745_v16 = vcombine.low %v694_v11, %v726_v13  ;;  %v886_v29 = vcombine.high %v846_v40, %v878_v45 }
 0x18e   :  { %5119 = vmatmul.mubr.msk.bf16.vlgmr.msra.gmra.mxu1 %vm1039_vm2, %v1023_v52  ;;  %v1036_v14 = vpack.c.bf16 %v885_v10, %v885_v10  ;;  %v1026_v24 = vpack.c.bf16 %v880_v21, %v880_v21  ;;  %v830_v25 = vrot.slane %v816_v19, %v5729_v34  ;;  %v862_v17 = vrot.slane %v848_v20, %v5729_v34 }
 0x18f   :  { %5129 = vmatpush3.bf16.xpose.msra.mxu1 %v1136_v63  ;;  %5130 = vmatprep.mubr.msk.bf16.mxu1 %vm5599_vm0, %v5598_v0  ;;  %v1037_v18 = vpack.c.bf16 %v750_v23, %v750_v23  ;;  %v1027_v28 = vpack.c.bf16 %v745_v16, %v745_v16  ;;  %v1038_v32 = vpack.c.bf16 %v886_v29, %v886_v29  ;;  %v5897_v16 = vpop.permute.xlu1 %183 }
 0x190   :  { %5140 = vmatprep.subr.bf16.mxu1 %v5598_v0  ;;  %v1274_v26 = vsel %vm1039_vm2, %v1036_v14, 0  ;;  %v881_v30 = vcombine.low %v830_v25, %v862_v17  ;;  %v746_v33 = vcombine.high %v694_v11, %v726_v13  ;;  %v882_v41 = vcombine.high %v830_v25, %v862_v17 }
 0x191   :  { %v1320_v31 = vsel %vm1039_vm2, %v1037_v18, 0  ;;  %v1366_v38 = vsel %vm1039_vm2, %v1038_v32, 0 }
 0x192   :  { %5125 = vmatmul.mubr.msk.bf16.vlgmr.msra.gmra.mxu0 %vm1039_vm2, %v1024_v3  ;;  %v1028_v35 = vpack.c.bf16 %v881_v30, %v881_v30  ;;  %v1029_v39 = vpack.c.bf16 %v746_v33, %v746_v33  ;;  %v1030_v42 = vpack.c.bf16 %v882_v41, %v882_v41 }
 0x193   :  { %5135 = vmatpush3.bf16.xpose.msra.mxu0 %v1182_v9  ;;  %5136 = vmatprep.mubr.msk.bf16.mxu0 %vm5599_vm0, %v5598_v0  ;;  %v5901_v25 = vpop.permute.xlu1 %189 }
 0x194   :  { %5146 = vmatprep.subr.bf16.mxu0 %v5598_v0 }
 0x196   :  { %5131 = vmatmul.mubr.msk.bf16.vlgmr.msra.gmra.mxu1 %vm1039_vm2, %v1025_v6 }
 0x197   :  { %5141 = vmatpush3.bf16.xpose.msra.mxu1 %v1228_v22  ;;  %5142 = vmatprep.mubr.msk.bf16.mxu1 %vm5599_vm0, %v5598_v0 }
 0x198   :  { %5152 = vmatprep.subr.bf16.mxu1 %v5598_v0 }
 0x19a   :  { %5137 = vmatmul.mubr.msk.bf16.vlgmr.msra.gmra.mxu0 %vm1039_vm2, %v1026_v24  ;;  %v5899_v24 = vpop.permute.xlu0 %185 }
 0x19b   :  { %5147 = vmatpush3.bf16.xpose.msra.mxu0 %v1274_v26  ;;  %5148 = vmatprep.mubr.msk.bf16.mxu0 %vm5599_vm0, %v5598_v0  ;;  %v5903_v26 = vpop.permute.xlu1 %191 }
 0x19c   :  { %5158 = vmatprep.subr.bf16.mxu0 %v5598_v0 }
 0x19e   :  { %5143 = vmatmul.mubr.msk.bf16.vlgmr.msra.gmra.mxu1 %vm1039_vm2, %v1027_v28 }
 0x19f   :  { %5153 = vmatpush3.bf16.xpose.msra.mxu1 %v1320_v31  ;;  %5154 = vmatprep.mubr.msk.bf16.mxu1 %vm5599_vm0, %v5598_v0 }
 0x1a0   :  { %5164 = vmatprep.subr.bf16.mxu1 %v5598_v0 }
 0x1a2   :  { %5149 = vmatmul.mubr.msk.bf16.vlgmr.msra.gmra.mxu0 %vm1039_vm2, %v1028_v35 }
 0x1a3   :  { %5159 = vmatpush3.bf16.xpose.msra.mxu0 %v1366_v38  ;;  %5160 = vmatprep.mubr.msk.bf16.mxu0 %vm5599_vm0, %v5598_v0 }
 0x1a4   :  { %5170 = vmatprep.subr.bf16.mxu0 %v5598_v0 }
 0x1a6   :  { %5155 = vmatmul.mubr.msk.bf16.vlgmr.msra.gmra.mxu1 %vm1039_vm2, %v1029_v39 }
 0x1a7   :  { %5166 = vmatprep.mubr.msk.bf16.mxu1 %vm5599_vm0, %v5598_v0 }
 0x1aa   :  { %5161 = vmatmul.mubr.msk.bf16.vlgmr.msra.gmra.mxu0 %vm1039_vm2, %v1030_v42 }
 0x1ab   :  { %5172 = vmatprep.mubr.msk.bf16.mxu0 %vm5599_vm0, %v5598_v0 }
 0x24e   :  { %v1080_v36 = vpop.f32.mrf.mxu1 }
 0x24f   :  { %v1408_v37 = vsel %vm1039_vm2, %v1080_v36, -inf }
 0x250   :  { %1409 = vmax.xlane.f32.xlu0 %v1408_v37  ;;  %v5120_v43 = vpop.f32.mrf.mxu1 }
 0x252   :  { %v1083_v44 = vpop.f32.mrf.mxu1  ;;  %v1126_v46 = vpop.f32.mrf.mxu0 }
 0x253   :  { %v1411_v48 = vsel %vm1039_vm2, %v1126_v46, -inf }
 0x254   :  { %v5121_v47 = vpop.f32.mrf.mxu1  ;;  %1412 = vmax.xlane.f32.xlu1 %v1411_v48  ;;  %v5126_v49 = vpop.f32.mrf.mxu0 }
 0x256   :  { %v5881_v50 = vpop.f32.mrf.mxu1  ;;  %v1129_v52 = vpop.f32.mrf.mxu0 }
 0x257   :  { %v1414_v51 = vsel %vm1039_vm2, %v5881_v50, -inf }
 0x258   :  { %1415 = vmax.xlane.f32.xlu0 %v1414_v51  ;;  %v5132_v53 = vpop.f32.mrf.mxu1  ;;  %v5127_v54 = vpop.f32.mrf.mxu0 }
 0x25a   :  { %v1175_v55 = vpop.f32.mrf.mxu1  ;;  %v1218_v56 = vpop.f32.mrf.mxu0 }
 0x25b   :  { %v1417_v60 = vsel %vm1039_vm2, %v1218_v56, -inf }
 0x25c   :  { %v5133_v59 = vpop.f32.mrf.mxu1  ;;  %v5138_v57 = vpop.f32.mrf.mxu0  ;;  %1418 = vmax.xlane.f32.xlu0 %v1417_v60 }
 0x25e   :  { %v5886_v58 = vpop.f32.mrf.mxu1  ;;  %v1221_v1 = vpop.f32.mrf.mxu0 }
 0x25f   :  { %v1420_v63 = vsel %vm1039_vm2, %v5886_v58, -inf }
 0x260   :  { %1421 = vmax.xlane.f32.xlu1 %v1420_v63  ;;  %v5144_v61 = vpop.f32.mrf.mxu1  ;;  %v5139_v62 = vpop.f32.mrf.mxu0 }
 0x262   :  { %v1267_v2 = vpop.f32.mrf.mxu1  ;;  %v1310_v3 = vpop.f32.mrf.mxu0 }
 0x263   :  { %v1423_v40 = vsel %vm1039_vm2, %v1310_v3, -inf }
 0x264   :  { %v5145_v4 = vpop.f32.mrf.mxu1  ;;  %v5150_v45 = vpop.f32.mrf.mxu0  ;;  %1424 = vmax.xlane.f32.xlu0 %v1423_v40 }
 0x266   :  { %v1356_v5 = vpop.f32.mrf.mxu1  ;;  %v1313_v9 = vpop.f32.mrf.mxu0 }
 0x267   :  { %v1426_v6 = vsel %vm1039_vm2, %v1356_v5, -inf }
 0x268   :  { %1427 = vmax.xlane.f32.xlu1 %v1426_v6  ;;  %v5156_v10 = vpop.f32.mrf.mxu1  ;;  %v5151_v11 = vpop.f32.mrf.mxu0 }
 0x26a   :  { %v1359_v13 = vpop.f32.mrf.mxu1  ;;  %v1402_v19 = vpop.f32.mrf.mxu0 }
 0x26b   :  { %v1429_v21 = vsel %vm1039_vm2, %v1402_v19, -inf }
 0x26c   :  { %v5157_v20 = vpop.f32.mrf.mxu1  ;;  %v5162_v22 = vpop.f32.mrf.mxu0  ;;  %1430 = vmax.xlane.f32.xlu0 %v1429_v21 }
 0x26e   :  { %v1405_v23 = vpop.f32.mrf.mxu0 }
 0x270   :  { %v5163_v14 = vpop.f32.mrf.mxu0 }
 0x279   :  { %197 = vrot.lane.b32.xlu1 %v5691_v15, %s5611_s20 }
 0x282   :  { %195 = vrot.lane.b32.xlu0 %v5685_v12, %s5611_s20 }
 0x2d9   :  { %v1410_v17 = vpop.xlane.xlu0 %1409 }
 0x2da   :  { %v1432_v18 = vsub.f32 %v1080_v36, %v1410_v17 }
 0x2dc   :  { %v1440_v28 = vmul.f32 1.442695, %v1432_v18 }
 0x2dd   :  { %v1413_v29 = vpop.xlane.xlu1 %1412 }
 0x2de   :  { %5444 = vpow2.f32 %v1440_v28  ;;  %v1433_v30 = vsub.f32 %v1126_v46, %v1413_v29 }
 0x2e0   :  { %v1442_v31 = vmul.f32 1.442695, %v1433_v30 }
 0x2e1   :  { %v1416_v39 = vpop.xlane.xlu0 %1415 }
 0x2e2   :  { %5446 = vpow2.f32 %v1442_v31  ;;  %v1434_v46 = vsub.f32 %v5881_v50, %v1416_v39 }
 0x2e4   :  { %v1444_v48 = vmul.f32 1.442695, %v1434_v46 }
 0x2e5   :  { %v1419_v41 = vpop.xlane.xlu0 %1418 }
 0x2e6   :  { %v1435_v36 = vsub.f32 %v1218_v56, %v1419_v41 }
 0x2e8   :  { %v1446_v43 = vmul.f32 1.442695, %v1435_v36 }
 0x2e9   :  { %v1422_v42 = vpop.xlane.xlu1 %1421 }
 0x2ea   :  { %5448 = vpow2.f32 %v1446_v43  ;;  %v1436_v49 = vsub.f32 %v5886_v58, %v1422_v42 }
 0x2eb   :  { %v5905_v32 = vpop.eup %5444 }
 0x2ec   :  { %v1456_v33 = vsel %vm1039_vm2, %v5905_v32, 0.0 }
 0x2ed   :  { %1457 = vadd.xlane.f32.xlu1 %v1456_v33  ;;  %v1425_v51 = vpop.xlane.xlu0 %1424 }
 0x2ee   :  { %v1437_v52 = vsub.f32 %v1310_v3, %v1425_v51 }
 0x2ef   :  { %v5909_v35 = vpop.eup %5446 }
 0x2f0   :  { %v1459_v38 = vsel %vm1039_vm2, %v5909_v35, 0.0  ;;  %v1450_v54 = vmul.f32 1.442695, %v1437_v52 }
 0x2f1   :  { %1460 = vadd.xlane.f32.xlu0 %v1459_v38  ;;  %v1428_v37 = vpop.xlane.xlu1 %1427 }
 0x2f2   :  { %v1438_v44 = vsub.f32 %v1356_v5, %v1428_v37 }
 0x2f4   :  { %v1452_v47 = vmul.f32 1.442695, %v1438_v44 }
 0x2f5   :  { %v1431_v53 = vpop.xlane.xlu0 %1430  ;;  %v198_v4 = vpop.permute.xlu1 %197 }
 0x2f6   :  { %5450 = vpow2.f32 %v1452_v47  ;;  %v1439_v55 = vsub.f32 %v1402_v19, %v1431_v53  ;;  %v547_v45 = vcombine.low %v5899_v24, %v198_v4  ;;  %v548_v6 = vcombine.high %v5899_v24, %v198_v4 }
 0x2f7   :  { %5452 = vpow2.f32 %v1444_v48 }
 0x2f8   :  { %v1454_v56 = vmul.f32 1.442695, %v1439_v55  ;;  %v555_v13 = vrot.slane %v547_v45, %v5726_v27  ;;  %v562_v20 = vrot.slane %v548_v6, %v5726_v27 }
 0x2f9   :  { %v196_v5 = vpop.permute.xlu0 %195 }
 0x2fa   :  { %v343_v23 = vcombine.low %v5897_v16, %v196_v5  ;;  %v344_v28 = vcombine.high %v5897_v16, %v196_v5 }
 0x2fc   :  { %v351_v38 = vrot.slane %v343_v23, %v5726_v27  ;;  %v358_v16 = vrot.slane %v344_v28, %v5726_v27 }
 0x2fe   :  { %203 = vrot.lane.b32.xlu1 %v5691_v15, %s5612_s21  ;;  %v1448_v15 = vmul.f32 1.442695, %v1436_v49 }
 0x300   :  { %5454 = vpow2.f32 %v1448_v15 }
 0x301   :  { %5456 = vpow2.f32 %v1450_v54 }
 0x302   :  { %5458 = vpow2.f32 %v1454_v56 }
 0x307   :  { %201 = vrot.lane.b32.xlu0 %v5685_v12, %s5612_s21  ;;  %v5919_v12 = vpop.eup %5448 }
 0x308   :  { %v1465_v50 = vsel %vm1039_vm2, %v5919_v12, 0.0  ;;  %v5923_v59 = vpop.eup %5450 }
 0x309   :  { %v5925_v60 = vpop.eup %5452  ;;  %v1474_v57 = vsel %vm1039_vm2, %v5923_v59, 0.0 }
 0x30a   :  { %v1462_v58 = vsel %vm1039_vm2, %v5925_v60, 0.0 }
 0x30d   :  { %v5931_v63 = vpop.eup %5454 }
 0x30e   :  { %v1468_v1 = vsel %vm1039_vm2, %v5931_v63, 0.0  ;;  %v5935_v61 = vpop.eup %5456 }
 0x30f   :  { %v1471_v62 = vsel %vm1039_vm2, %v5935_v61, 0.0  ;;  %v5939_v2 = vpop.eup %5458 }
 0x310   :  { %v1477_v3 = vsel %vm1039_vm2, %v5939_v2, 0.0 }
 0x322   :  { %1466 = vadd.xlane.f32.xlu1 %v1465_v50 }
 0x326   :  { %1475 = vadd.xlane.f32.xlu1 %v1474_v57  ;;  %1463 = vadd.xlane.f32.xlu0 %v1462_v58 }
 0x32a   :  { %1469 = vadd.xlane.f32.xlu0 %v1468_v1 }
 0x32e   :  { %1472 = vadd.xlane.f32.xlu0 %v1471_v62 }
 0x332   :  { %1478 = vadd.xlane.f32.xlu0 %v1477_v3 }
 0x376   :  { %v1458_v40 = vpop.xlane.xlu1 %1457 }
 0x37a   :  { %v204_v9 = vpop.permute.xlu1 %203  ;;  %v1461_v19 = vpop.xlane.xlu0 %1460 }
 0x37b   :  { %v563_v10 = vcombine.low %v5903_v26, %v204_v9  ;;  %v564_v11 = vcombine.high %v5903_v26, %v204_v9  ;;  %5460 = vrcp.f32 %v1461_v19 }
 0x37c   :  { %5462 = vrcp.f32 %v1458_v40 }
 0x37d   :  { %v571_v21 = vrot.slane %v563_v10, %v5726_v27  ;;  %v578_v22 = vrot.slane %v564_v11, %v5726_v27 }
 0x37e   :  { %v202_v29 = vpop.permute.xlu0 %201 }
 0x37f   :  { %v579_v14 = vcombine.low %v555_v13, %v571_v21  ;;  %v580_v17 = vcombine.high %v555_v13, %v571_v21  ;;  %v595_v24 = vcombine.low %v562_v20, %v578_v22  ;;  %v596_v18 = vcombine.high %v562_v20, %v578_v22 }
 0x380   :  { %v359_v39 = vcombine.low %v5901_v25, %v202_v29  ;;  %v360_v41 = vcombine.high %v5901_v25, %v202_v29 }
 0x381   :  { %v587_v26 = vrot.slane %v579_v14, %v5729_v34  ;;  %v594_v30 = vrot.slane %v580_v17, %v5729_v34  ;;  %v603_v31 = vrot.slane %v595_v24, %v5729_v34  ;;  %v610_v33 = vrot.slane %v596_v18, %v5729_v34 }
 0x382   :  { %v367_v44 = vrot.slane %v359_v39, %v5726_v27  ;;  %v374_v46 = vrot.slane %v360_v41, %v5726_v27 }
 0x383   :  { %v955_v42 = vcombine.low %v587_v26, %v594_v30  ;;  %v4909_v36 = vcombine.high %v587_v26, %v594_v30  ;;  %v971_v37 = vcombine.low %v603_v31, %v610_v33  ;;  %v4910_v43 = vcombine.high %v603_v31, %v610_v33 }
 0x384   :  { %v375_v51 = vcombine.low %v351_v38, %v367_v44  ;;  %v376_v15 = vcombine.high %v351_v38, %v367_v44  ;;  %v391_v52 = vcombine.low %v358_v16, %v374_v46  ;;  %v392_v53 = vcombine.high %v358_v16, %v374_v46 }
 0x385   :  { %v5964_v47 = vrot.slane %v955_v42, %v5726_v27  ;;  %v5967_v48 = vrot.slane %v4909_v36, %v5726_v27  ;;  %v5970_v49 = vrot.slane %v971_v37, %v5726_v27  ;;  %v5973_v25 = vrot.slane %v4910_v43, %v5726_v27 }
 0x386   :  { %v383_v56 = vrot.slane %v375_v51, %v5729_v34  ;;  %v390_v50 = vrot.slane %v376_v15, %v5729_v34  ;;  %v399_v57 = vrot.slane %v391_v52, %v5729_v34  ;;  %v406_v58 = vrot.slane %v392_v53, %v5729_v34 }
 0x387   :  { %v987_v54 = vcombine.low %v5964_v47, %v5967_v48  ;;  %v1003_v55 = vcombine.low %v5970_v49, %v5973_v25  ;;  %v988_v36 = vcombine.high %v5964_v47, %v5967_v48  ;;  %v1004_v37 = vcombine.high %v5970_v49, %v5973_v25 }
 0x388   :  { %v5461_v3 = vpop.eup %5460  ;;  %v887_v4 = vcombine.low %v383_v56, %v390_v50  ;;  %v4907_v40 = vcombine.high %v383_v56, %v390_v50  ;;  %v903_v45 = vcombine.low %v399_v57, %v406_v58  ;;  %v4908_v5 = vcombine.high %v399_v57, %v406_v58 }
 0x389   :  { %v995_v1 = vrot.slane %v987_v54, %v5729_v34  ;;  %v1011_v62 = vrot.slane %v1003_v55, %v5729_v34  ;;  %v1489_v21 = vmul.f32 %v5461_v3, %v5909_v35  ;;  %v5463_v28 = vpop.eup %5462  ;;  %v1002_v16 = vrot.slane %v988_v36, %v5729_v34 }
 0x38a   :  { %v894_v10 = vrot.slane %v887_v4, %v5726_v27  ;;  %v902_v11 = vrot.slane %v4907_v40, %v5726_v27  ;;  %v910_v13 = vrot.slane %v903_v45, %v5726_v27  ;;  %v918_v19 = vrot.slane %v4908_v5, %v5726_v27 }
 0x38b   :  { %v1019_v6 = vcombine.low %v995_v1, %v1011_v62  ;;  %v1020_v9 = vcombine.high %v995_v1, %v1011_v62  ;;  %v1497_v29 = vpack.c.bf16 %v1489_v21, %v1489_v21  ;;  %v1488_v33 = vmul.f32 %v5463_v28, %v5905_v32 }
 0x38c   :  { %v919_v22 = vcombine.low %v894_v10, %v902_v11  ;;  %v935_v23 = vcombine.low %v910_v13, %v918_v19  ;;  %v1018_v44 = vrot.slane %v1004_v37, %v5729_v34  ;;  %v920_v46 = vcombine.high %v894_v10, %v902_v11 }
 0x38d   :  { %v1505_v20 = vpack.c.bf16 %v1019_v6, %v1019_v6  ;;  %v1507_v17 = vpack.c.bf16 %v1020_v9, %v1020_v9  ;;  %v1496_v41 = vpack.c.bf16 %v1488_v33, %v1488_v33  ;;  %v936_v51 = vcombine.high %v910_v13, %v918_v19 }
 0x38e   :  { %v927_v24 = vrot.slane %v919_v22, %v5729_v34  ;;  %v943_v18 = vrot.slane %v935_v23, %v5729_v34  ;;  %v1021_v52 = vcombine.low %v1002_v16, %v1018_v44  ;;  %v934_v53 = vrot.slane %v920_v46, %v5729_v34 }
 0x38f   :  { %v1563_v14 = vsel %vm1515_vm3, %v1505_v20, 0  ;;  %v1655_v35 = vsel %vm1515_vm3, %v1507_v17, 0  ;;  %v950_v54 = vrot.slane %v936_v51, %v5729_v34  ;;  %v1022_v5 = vcombine.high %v1002_v16, %v1018_v44 }
 0x390   :  { %5171 = vmatpush3.bf16.msra.mxu0 %v1563_v14  ;;  %v951_v26 = vcombine.low %v927_v24, %v943_v18  ;;  %v952_v30 = vcombine.high %v927_v24, %v943_v18  ;;  %v1509_v25 = vpack.c.bf16 %v1021_v52, %v1021_v52 }
 0x391   :  { %5182 = vmatprep.subr.bf16.mxu0 %v5598_v0  ;;  %v953_v50 = vcombine.low %v934_v53, %v950_v54  ;;  %v954_v45 = vcombine.high %v934_v53, %v950_v54  ;;  %v1511_v11 = vpack.c.bf16 %v1022_v5, %v1022_v5 }
 0x392   :  { %v1504_v31 = vpack.c.bf16 %v951_v26, %v951_v26  ;;  %v1506_v39 = vpack.c.bf16 %v952_v30, %v952_v30  ;;  %v1747_v58 = vsel %vm1515_vm3, %v1509_v25, 0 }
 0x393   :  { %5173 = vmatmul.mubr.msk.bf16.vlgmr.msra.gmra.mxu0 %vm1039_vm2, %v1497_v29  ;;  %v1508_v3 = vpack.c.bf16 %v953_v50, %v953_v50  ;;  %v1510_v10 = vpack.c.bf16 %v954_v45, %v954_v45  ;;  %v1839_v23 = vsel %vm1515_vm3, %v1511_v11, 0 }
 0x394   :  { %5183 = vmatpush3.bf16.msra.mxu0 %v1655_v35  ;;  %5184 = vmatprep.mubr.msk.bf16.mxu0 %vm5599_vm0, %v5598_v0  ;;  %v1517_v38 = vsel %vm1515_vm3, %v1504_v31, 0  ;;  %v1609_v42 = vsel %vm1515_vm3, %v1506_v39, 0 }
 0x395   :  { %5194 = vmatprep.subr.bf16.mxu0 %v5598_v0  ;;  %5165 = vmatpush3.bf16.msra.mxu1 %v1517_v38  ;;  %v1701_v40 = vsel %vm1515_vm3, %v1508_v3, 0  ;;  %v1793_v22 = vsel %vm1515_vm3, %v1510_v10, 0 }
 0x396   :  { %5176 = vmatprep.subr.bf16.mxu1 %v5598_v0 }
 0x398   :  { %5167 = vmatmul.mubr.msk.bf16.vlgmr.msra.gmra.mxu1 %vm1039_vm2, %v1496_v41 }
 0x399   :  { %5177 = vmatpush3.bf16.msra.mxu1 %v1609_v42  ;;  %5178 = vmatprep.mubr.msk.bf16.mxu1 %vm5599_vm0, %v5598_v0 }
 0x39a   :  { %5188 = vmatprep.subr.bf16.mxu1 %v5598_v0 }
 0x3ab   :  { %v1467_v32 = vpop.xlane.xlu1 %1466 }
 0x3ac   :  { %5464 = vrcp.f32 %v1467_v32 }
 0x3af   :  { %v1464_v43 = vpop.xlane.xlu0 %1463  ;;  %v1476_v48 = vpop.xlane.xlu1 %1475 }
 0x3b0   :  { %5466 = vrcp.f32 %v1464_v43 }
 0x3b3   :  { %v1470_v15 = vpop.xlane.xlu0 %1469 }
 0x3b4   :  { %5468 = vrcp.f32 %v1470_v15 }
 0x3b7   :  { %v1473_v47 = vpop.xlane.xlu0 %1472 }
 0x3b8   :  { %5470 = vrcp.f32 %v1473_v47 }
 0x3b9   :  { %v5465_v55 = vpop.eup %5464  ;;  %5472 = vrcp.f32 %v1476_v48 }
 0x3ba   :  { %v1491_v49 = vmul.f32 %v5465_v55, %v5919_v12 }
 0x3bb   :  { %v1479_v57 = vpop.xlane.xlu0 %1478 }
 0x3bc   :  { %v1499_v56 = vpack.c.bf16 %v1491_v49, %v1491_v49  ;;  %5474 = vrcp.f32 %v1479_v57 }
 0x3bd   :  { %v5467_v1 = vpop.eup %5466 }
 0x3be   :  { %5185 = vmatmul.mubr.msk.bf16.vlgmr.msra.gmra.mxu0 %vm1039_vm2, %v1499_v56  ;;  %v1490_v62 = vmul.f32 %v5467_v1, %v5925_v60 }
 0x3bf   :  { %5195 = vmatpush3.bf16.msra.mxu0 %v1747_v58  ;;  %5196 = vmatprep.mubr.msk.bf16.mxu0 %vm5599_vm0, %v5598_v0 }
 0x3c0   :  { %5206 = vmatprep.subr.bf16.mxu0 %v5598_v0  ;;  %v1498_v12 = vpack.c.bf16 %v1490_v62, %v1490_v62 }
 0x3c1   :  { %v5469_v4 = vpop.eup %5468 }
 0x3c2   :  { %5179 = vmatmul.mubr.msk.bf16.vlgmr.msra.gmra.mxu1 %vm1039_vm2, %v1498_v12  ;;  %v1492_v6 = vmul.f32 %v5469_v4, %v5931_v63 }
 0x3c3   :  { %5189 = vmatpush3.bf16.msra.mxu1 %v1701_v40  ;;  %5190 = vmatprep.mubr.msk.bf16.mxu1 %vm5599_vm0, %v5598_v0 }
 0x3c4   :  { %5200 = vmatprep.subr.bf16.mxu1 %v5598_v0  ;;  %v1500_v19 = vpack.c.bf16 %v1492_v6, %v1492_v6 }
 0x3c5   :  { %v5471_v60 = vpop.eup %5470 }
 0x3c6   :  { %v1493_v9 = vmul.f32 %v5471_v60, %v5935_v61  ;;  %v5473_v13 = vpop.eup %5472 }
 0x3c7   :  { %v1494_v63 = vmul.f32 %v5473_v13, %v5923_v59 }
 0x3c8   :  { %v1501_v20 = vpack.c.bf16 %v1493_v9, %v1493_v9 }
 0x3c9   :  { %v5475_v21 = vpop.eup %5474  ;;  %v1502_v14 = vpack.c.bf16 %v1494_v63, %v1494_v63 }
 0x3ca   :  { %5191 = vmatmul.mubr.msk.bf16.vlgmr.msra.gmra.mxu1 %vm1039_vm2, %v1500_v19  ;;  %5197 = vmatmul.mubr.msk.bf16.vlgmr.msra.gmra.mxu0 %vm1039_vm2, %v1501_v20  ;;  %v1495_v61 = vmul.f32 %v5475_v21, %v5939_v2 }
 0x3cb   :  { %5201 = vmatpush3.bf16.msra.mxu1 %v1793_v22  ;;  %5207 = vmatpush3.bf16.msra.mxu0 %v1839_v23 }
 0x3cc   :  { %5202 = vmatprep.mubr.msk.bf16.mxu1 %vm5599_vm0, %v5598_v0  ;;  %5208 = vmatprep.mubr.msk.bf16.mxu0 %vm5599_vm0, %v5598_v0  ;;  %v1503_v17 = vpack.c.bf16 %v1495_v61, %v1495_v61 }
 0x3cd   :  { %5212 = vmatprep.subr.bf16.mxu1 %v5598_v0  ;;  %5220 = vmatprep.subr.bf16.mxu0 %v5598_v0 }
 0x3d2   :  { %5203 = vmatmul.mubr.msk.bf16.vlgmr.msra.gmra.mxu1 %vm1039_vm2, %v1502_v14  ;;  %5209 = vmatmul.mubr.msk.bf16.vlgmr.msra.gmra.mxu0 %vm1039_vm2, %v1503_v17 }
 0x3d3   :  { %5216 = vmatprep.mubr.msk.bf16.mxu1 %vm5599_vm0, %v5598_v0  ;;  %5224 = vmatprep.mubr.msk.bf16.mxu0 %vm5599_vm0, %v5598_v0 }
 0x453   :  { %v1599_v24 = vpop.f32.mrf.mxu0 }
 0x455   :  { %v5174_v59 = vpop.f32.mrf.mxu0 }
 0x457   :  { %v1602_v18 = vpop.f32.mrf.mxu0 }
 0x458   :  { %v1553_v28 = vpop.f32.mrf.mxu1 }
 0x459   :  { %v5175_v2 = vpop.f32.mrf.mxu0 }
 0x45a   :  { %v5168_v29 = vpop.f32.mrf.mxu1 }
 0x45c   :  { %v1556_v26 = vpop.f32.mrf.mxu1 }
 0x45e   :  { %v5169_v30 = vpop.f32.mrf.mxu1 }
 0x47e   :  { %v1691_v35 = vpop.f32.mrf.mxu0 }
 0x480   :  { %v5186_v31 = vpop.f32.mrf.mxu0 }
 0x482   :  { %v1694_v33 = vpop.f32.mrf.mxu0  ;;  %v1645_v38 = vpop.f32.mrf.mxu1 }
 0x484   :  { %v5187_v39 = vpop.f32.mrf.mxu0  ;;  %v5180_v41 = vpop.f32.mrf.mxu1 }
 0x486   :  { %v1648_v42 = vpop.f32.mrf.mxu1 }
 0x488   :  { %v5181_v32 = vpop.f32.mrf.mxu1 }
 0x48a   :  { %v1737_v36 = vpop.f32.mrf.mxu1  ;;  %v1783_v37 = vpop.f32.mrf.mxu0 }
 0x48b   :  { %v1881_v51 = vcombine.low %v1553_v28, %v1737_v36  ;;  %v1882_v15 = vcombine.high %v1553_v28, %v1737_v36  ;;  %v1949_v54 = vcombine.low %v1599_v24, %v1783_v37  ;;  %v1950_v55 = vcombine.high %v1599_v24, %v1783_v37  ;;  %v5426_v37 = vld [vmem:[%s6669_s2 + $0x8] sm:$0xff]  }
 0x48c   :  { %v5192_v43 = vpop.f32.mrf.mxu1  ;;  %v5198_v16 = vpop.f32.mrf.mxu0  ;;  %5213 = vmatpush3.bf16.msra.mxu1 %v5426_v37 }
 0x48d   :  { %v1889_v57 = vrot.slane %v1881_v51, %v5726_v27  ;;  %v1896_v58 = vrot.slane %v1882_v15, %v5726_v27  ;;  %v1957_v45 = vrot.slane %v1949_v54, %v5726_v27  ;;  %v1964_v5 = vrot.slane %v1950_v55, %v5726_v27  ;;  %5214 = vmatprep.subr.bf16.mxu1 %v5598_v0 }
 0x48e   :  { %v1740_v44 = vpop.f32.mrf.mxu1  ;;  %v1786_v46 = vpop.f32.mrf.mxu0 }
 0x490   :  { %v5193_v52 = vpop.f32.mrf.mxu1  ;;  %v5199_v53 = vpop.f32.mrf.mxu0 }
 0x492   :  { %v1829_v47 = vpop.f32.mrf.mxu1  ;;  %v1875_v48 = vpop.f32.mrf.mxu0 }
 0x493   :  { %v1897_v49 = vcombine.low %v1645_v38, %v1829_v47  ;;  %v1898_v25 = vcombine.high %v1645_v38, %v1829_v47  ;;  %v1965_v56 = vcombine.low %v1691_v35, %v1875_v48  ;;  %v1966_v50 = vcombine.high %v1691_v35, %v1875_v48 }
 0x494   :  { %v5204_v1 = vpop.f32.mrf.mxu1  ;;  %v5210_v62 = vpop.f32.mrf.mxu0 }
 0x495   :  { %v1905_v3 = vrot.slane %v1897_v49, %v5726_v27  ;;  %v1912_v12 = vrot.slane %v1898_v25, %v5726_v27  ;;  %v1973_v4 = vrot.slane %v1965_v56, %v5726_v27  ;;  %v1980_v40 = vrot.slane %v1966_v50, %v5726_v27 }
 0x496   :  { %v1832_v6 = vpop.f32.mrf.mxu1  ;;  %v1878_v60 = vpop.f32.mrf.mxu0 }
 0x497   :  { %v1913_v9 = vcombine.low %v1889_v57, %v1905_v3  ;;  %v1914_v10 = vcombine.high %v1889_v57, %v1905_v3  ;;  %v1929_v11 = vcombine.low %v1896_v58, %v1912_v12  ;;  %v1930_v13 = vcombine.high %v1896_v58, %v1912_v12  ;;  %v5427_v3 = vld [vmem:[%s6669_s2] sm:$0xff]  }
 0x498   :  { %v1981_v19 = vcombine.low %v1957_v45, %v1973_v4  ;;  %v1982_v20 = vcombine.high %v1957_v45, %v1973_v4  ;;  %v1997_v21 = vcombine.low %v1964_v5, %v1980_v40  ;;  %v1998_v22 = vcombine.high %v1964_v5, %v1980_v40  ;;  %v5205_v23 = vpop.f32.mrf.mxu1  ;;  %v5211_v63 = vpop.f32.mrf.mxu0  ;;  %5215 = vmatpush3.bf16.msra.mxu1 %v5427_v3 }
 0x499   :  { %v1921_v61 = vrot.slane %v1913_v9, %v5729_v34  ;;  %v1928_v14 = vrot.slane %v1914_v10, %v5729_v34  ;;  %v1937_v17 = vrot.slane %v1929_v11, %v5729_v34  ;;  %v1944_v24 = vrot.slane %v1930_v13, %v5729_v34  ;;  %5228 = vmatprep.subr.bf16.mxu1 %v5598_v0 }
 0x49a   :  { %v1989_v59 = vrot.slane %v1981_v19, %v5729_v34  ;;  %v1996_v18 = vrot.slane %v1982_v20, %v5729_v34  ;;  %v2005_v2 = vrot.slane %v1997_v21, %v5729_v34  ;;  %v2012_v28 = vrot.slane %v1998_v22, %v5729_v34 }
 0x49b   :  { %v2017_v29 = vcombine.low %v1921_v61, %v1928_v14  ;;  %v4927_v26 = vcombine.high %v1921_v61, %v1928_v14  ;;  %v2033_v30 = vcombine.low %v1937_v17, %v1944_v24  ;;  %v4928_v35 = vcombine.high %v1937_v17, %v1944_v24 }
 0x49c   :  { %v2085_v31 = vcombine.low %v1989_v59, %v1996_v18  ;;  %v4929_v33 = vcombine.high %v1989_v59, %v1996_v18  ;;  %v2101_v38 = vcombine.low %v2005_v2, %v2012_v28  ;;  %v4930_v39 = vcombine.high %v2005_v2, %v2012_v28 }
 0x49d   :  { %v2024_v41 = vrot.slane %v2017_v29, %v5726_v27  ;;  %v2032_v42 = vrot.slane %v4927_v26, %v5726_v27  ;;  %v2040_v32 = vrot.slane %v2033_v30, %v5726_v27  ;;  %v2048_v36 = vrot.slane %v4928_v35, %v5726_v27  ;;  %v6100_v35 = vld [vmem:[#allocation5] sm:$0xff] }
 0x49e   :  { %v2092_v43 = vrot.slane %v2085_v31, %v5726_v27  ;;  %v2100_v16 = vrot.slane %v4929_v33, %v5726_v27  ;;  %v2108_v44 = vrot.slane %v2101_v38, %v5726_v27  ;;  %v2116_v46 = vrot.slane %v4930_v39, %v5726_v27 }
 0x49f   :  { %v2050_v51 = vcombine.high %v2024_v41, %v2032_v42  ;;  %v2066_v15 = vcombine.high %v2040_v32, %v2048_v36  ;;  %v2049_v52 = vcombine.low %v2024_v41, %v2032_v42  ;;  %v2065_v53 = vcombine.low %v2040_v32, %v2048_v36  ;;  %v5525_v41 = vld [vmem:[#allocation2] sm:$0xff] }
 0x4a0   :  { %v2118_v54 = vcombine.high %v2092_v43, %v2100_v16  ;;  %v2134_v55 = vcombine.high %v2108_v44, %v2116_v46  ;;  %v2117_v47 = vcombine.low %v2092_v43, %v2100_v16  ;;  %v2133_v48 = vcombine.low %v2108_v44, %v2116_v46  ;;  %v5526_v16 = vld [vmem:[#allocation2 + $0x8] sm:$0xff] }
 0x4a1   :  { %v2064_v49 = vrot.slane %v2050_v51, %v5729_v34  ;;  %v2080_v25 = vrot.slane %v2066_v15, %v5729_v34  ;;  %v2057_v56 = vrot.slane %v2049_v52, %v5729_v34  ;;  %v2073_v50 = vrot.slane %v2065_v53, %v5729_v34 }
 0x4a2   :  { %v2132_v57 = vrot.slane %v2118_v54, %v5729_v34  ;;  %v2148_v58 = vrot.slane %v2134_v55, %v5729_v34  ;;  %v2125_v1 = vrot.slane %v2117_v47, %v5729_v34  ;;  %v2141_v62 = vrot.slane %v2133_v48, %v5729_v34 }
 0x4a3   :  { %v2083_v12 = vcombine.low %v2064_v49, %v2080_v25  ;;  %v2081_v4 = vcombine.low %v2057_v56, %v2073_v50  ;;  %v2082_v40 = vcombine.high %v2057_v56, %v2073_v50  ;;  %v2084_v10 = vcombine.high %v2064_v49, %v2080_v25  ;;  %v5428_v56 = vld [vmem:[%s6670_s3 + $0x8] sm:$0xff]   ;;  %v5429_v50 = vld [vmem:[%s6670_s3] sm:$0xff]  }
 0x4a4   :  { %v2151_v45 = vcombine.low %v2132_v57, %v2148_v58  ;;  %v2150_v5 = vcombine.high %v2125_v1, %v2141_v62  ;;  %v2149_v6 = vcombine.low %v2125_v1, %v2141_v62  ;;  %v2152_v11 = vcombine.high %v2132_v57, %v2148_v58  ;;  %5221 = vmatpush3.bf16.msra.mxu0 %v5428_v56  ;;  %v5430_v57 = vld [vmem:[%s6671_s4 + $0x18] sm:$0xff]  }
 0x4a5   :  { %v2188_v30 = vsub.s32 1, %v5680_v7  ;;  %5222 = vmatprep.subr.bf16.mxu0 %v5598_v0 }
 0x4a6   :  { %v5399_v60 = vpack.i.bf16 %v2151_v45, %v2083_v12  ;;  %v5394_v9 = vpack.i.bf16 %v2150_v5, %v2082_v40  ;;  %v5404_v13 = vpack.i.bf16 %v2152_v11, %v2084_v10  ;;  %v2277_v40 = vsub.s32 2, %v5680_v7 }
 0x4a7   :  { %v2189_v31 = vrot.slane %v6100_v35, %v2188_v30 }
 0x4a8   :  { %5400 = vrot.lane.b32.xlu0 %v5399_v60, %s5613_s28  ;;  %5395 = vrot.lane.b32.xlu1 %v5394_v9, %s5596_s25  ;;  %v2283_v60 = vsub.s32 3, %v5680_v7 }
 0x4a9   :  { %5223 = vmatpush3.bf16.msra.mxu0 %v5429_v50  ;;  %v5434_v50 = vld [vmem:[%s6668_s1 + $0x18] sm:$0xff]  }
 0x4aa   :  { %5240 = vmatprep.subr.bf16.mxu0 %v5598_v0 }
 0x4ac   :  { %5405 = vrot.lane.b32.xlu1 %v5404_v13, %s5614_s29  ;;  %v2284_v13 = vrot.slane %v6100_v35, %v2283_v60 }
 0x51a   :  { %v5401_v19 = vpop.permute.xlu0 %5400  ;;  %v5396_v20 = vpop.permute.xlu1 %5395 }
 0x51b   :  { %v5398_v21 = vunpack.i.h.bf16 %v5396_v20  ;;  %v5397_v22 = vunpack.i.l.bf16 %v5396_v20  ;;  %v5403_v23 = vunpack.i.h.bf16 %v5401_v19  ;;  %v5402_v63 = vunpack.i.l.bf16 %v5401_v19 }
 0x51d   :  { %v2177_v61 = vsel %vm1039_vm2, %v2081_v4, %v5397_v22  ;;  %v2178_v14 = vsel %vm1039_vm2, %v2149_v6, %v5398_v21  ;;  %v2278_v6 = vrot.slane %v6100_v35, %v2277_v40 }
 0x51e   :  { %v5406_v17 = vpop.permute.xlu1 %5405  ;;  %v2180_v18 = vsel %vm2179_vm4, %v2177_v61, %v5402_v63  ;;  %v2181_v2 = vsel %vm2179_vm4, %v2178_v14, %v5403_v23  ;;  %v5431_v23 = vld [vmem:[%s6671_s4 + $0x10] sm:$0xff]   ;;  %v5432_v63 = vld [vmem:[%s6671_s4 + $0x8] sm:$0xff]   ;;  %v5433_v61 = vld [vmem:[%s6671_s4] sm:$0xff]   ;;  %v2290_v14 = vsub.s32 4, %v5680_v7 }
 0x51f   :  { %v5408_v24 = vunpack.i.h.bf16 %v5406_v17  ;;  %v5407_v59 = vunpack.i.l.bf16 %v5406_v17 }
 0x520   :  { %v2291_v17 = vrot.slane %v6100_v35, %v2290_v14 }
 0x521   :  { %v2183_v28 = vsel %vm2182_vm5, %v2180_v18, %v5407_v59  ;;  %v2184_v29 = vsel %vm2182_vm5, %v2181_v2, %v5408_v24 }
 0x522   :  { %v2185_v26 = vpack.c.bf16 %v2184_v29, %v2183_v28 }
 0x524   :  { %5217 = vmatmul.mubr.msk.bf16.vlgmr.msra.gmra.mxu1 %vm94_vm1, %v2185_v26 }
 0x525   :  { %5236 = vmatprep.mubr.msk.bf16.mxu1 %vm5599_vm0, %v5598_v0  ;;  %5229 = vmatpush3.bf16.msra.mxu1 %v5430_v57  ;;  %v5435_v57 = vld [vmem:[%s6668_s1 + $0x10] sm:$0xff]  }
 0x526   :  { %5230 = vmatprep.subr.bf16.mxu1 %v5598_v0 }
 0x529   :  { %5231 = vmatpush3.bf16.msra.mxu1 %v5431_v23 }
 0x52a   :  { %5232 = vmatprep.subr.bf16.mxu1 %v5598_v0 }
 0x52d   :  { %5233 = vmatpush3.bf16.msra.mxu1 %v5432_v63 }
 0x52e   :  { %5234 = vmatprep.subr.bf16.mxu1 %v5598_v0 }
 0x531   :  { %5235 = vmatpush3.bf16.msra.mxu1 %v5433_v61  ;;  %v54_v61 = vld [vmem:[#allocation5 + $0x8] sm:$0xff] }
 0x532   :  { %5254 = vmatprep.subr.bf16.mxu1 %v5598_v0 }
 0x5e4   :  { %v2239_v33 = vpop.f32.mrf.mxu1 }
 0x5e5   :  { %v2240_v38 = vadd.f32 %v2239_v33, %v2189_v31 }
 0x5e6   :  { %v5218_v39 = vpop.f32.mrf.mxu1 }
 0x5e7   :  { %v2246_v42 = vadd.f32 %v5525_v41, %v2240_v38  ;;  %v2353_v38 = vsub.s32 5, %v5680_v7 }
 0x5e8   :  { %v2242_v32 = vpop.f32.mrf.mxu1 }
 0x5e9   :  { %v2243_v36 = vadd.f32 %v2242_v32, %v2189_v31  ;;  %v2248_v37 = vsel %vm94_vm1, %v2246_v42, 0.0  ;;  %v2354_v39 = vrot.slane %v6100_v35, %v2353_v38 }
 0x5ea   :  { %2249 = vadd.xlane.f32.xlu1 %v2248_v37  ;;  %v5219_v43 = vpop.f32.mrf.mxu1 }
 0x5eb   :  { %v2247_v44 = vadd.f32 %v5526_v16, %v2243_v36 }
 0x5ed   :  { %v2251_v46 = vsel %vm94_vm1, %v2247_v44, 0.0 }
 0x5ee   :  { %2252 = vadd.xlane.f32.xlu0 %v2251_v46 }
 0x673   :  { %v2250_v51 = vpop.xlane.xlu1 %2249 }
 0x674   :  { %v2255_v15 = vmul.f32 0.03125, %v2250_v51 }
 0x676   :  { %v2257_v52 = vsub.f32 %v2246_v42, %v2255_v15 }
 0x677   :  { %v2253_v53 = vpop.xlane.xlu0 %2252 }
 0x678   :  { %v2256_v54 = vmul.f32 0.03125, %v2253_v53  ;;  %v2259_v55 = vmul.f32 %v2257_v52, %v2257_v52 }
 0x67a   :  { %v2258_v47 = vsub.f32 %v2247_v44, %v2256_v54  ;;  %v2261_v48 = vsel %vm94_vm1, %v2259_v55, 0.0 }
 0x67b   :  { %2262 = vadd.xlane.f32.xlu0 %v2261_v48 }
 0x67c   :  { %v2260_v49 = vmul.f32 %v2258_v47, %v2258_v47 }
 0x67e   :  { %v2264_v25 = vsel %vm94_vm1, %v2260_v49, 0.0 }
 0x67f   :  { %2265 = vadd.xlane.f32.xlu1 %v2264_v25 }
 0x704   :  { %v2263_v58 = vpop.xlane.xlu0 %2262 }
 0x705   :  { %v2267_v1 = vmul.f32 0.03125, %v2263_v58 }
 0x707   :  { %v2269_v62 = vadd.f32 1e-05, %v2267_v1 }
 0x708   :  { %v2266_v3 = vpop.xlane.xlu1 %2265 }
 0x709   :  { %5476 = vrsqrt.f32 %v2269_v62  ;;  %v2268_v12 = vmul.f32 0.03125, %v2266_v3 }
 0x70b   :  { %v2270_v4 = vadd.f32 1e-05, %v2268_v12 }
 0x70d   :  { %5478 = vrsqrt.f32 %v2270_v4 }
 0x716   :  { %v5477_v45 = vpop.eup %5476 }
 0x717   :  { %v2273_v5 = vmul.f32 %v5477_v45, %v2257_v52  ;;  %v2454_v45 = vsub.s32 6, %v5680_v7 }
 0x719   :  { %v2279_v11 = vmul.f32 %v2278_v6, %v2273_v5 }
 0x71a   :  { %v5479_v9 = vpop.eup %5478 }
 0x71b   :  { %v2274_v10 = vmul.f32 %v5479_v9, %v2258_v47  ;;  %v2285_v20 = vadd.f32 %v2284_v13, %v2279_v11  ;;  %v2455_v9 = vrot.slane %v6100_v35, %v2454_v45 }
 0x71d   :  { %v2280_v19 = vmul.f32 %v2278_v6, %v2274_v10  ;;  %v2460_v10 = vsub.s32 7, %v5680_v7 }
 0x71f   :  { %v2286_v21 = vadd.f32 %v2284_v13, %v2280_v19 }
 0x721   :  { %v2287_v22 = vpack.c.bf16 %v2286_v21, %v2285_v20 }
 0x723   :  { %5225 = vmatmul.mubr.msk.bf16.vlgmr.msra.gmra.mxu0 %vm94_vm1, %v2287_v22 }
 0x724   :  { %5244 = vmatprep.mubr.msk.bf16.mxu0 %vm5599_vm0, %v5598_v0  ;;  %5241 = vmatpush3.bf16.msra.mxu0 %v5434_v50 }
 0x725   :  { %5242 = vmatprep.subr.bf16.mxu0 %v5598_v0 }
 0x728   :  { %5243 = vmatpush3.bf16.msra.mxu0 %v5435_v57 }
 0x729   :  { %5248 = vmatprep.subr.bf16.mxu0 %v5598_v0 }
 0x7e3   :  { %v2341_v24 = vpop.f32.mrf.mxu0 }
 0x7e4   :  { %v2342_v18 = vadd.f32 %v2341_v24, %v2291_v17 }
 0x7e5   :  { %v5226_v59 = vpop.f32.mrf.mxu0 }
 0x7e6   :  { %v2348_v26 = vmax.f32 %v2342_v18, 0.0 }
 0x7e7   :  { %v2344_v2 = vpop.f32.mrf.mxu0 }
 0x7e8   :  { %v2345_v28 = vadd.f32 %v2344_v2, %v2291_v17  ;;  %v2492_v17 = vrot.slane %v54_v61, %v80_v8 }
 0x7e9   :  { %v5227_v29 = vpop.f32.mrf.mxu0 }
 0x7ea   :  { %v2349_v31 = vmax.f32 %v2345_v28, 0.0 }
 0x7ec   :  { %v2350_v33 = vpack.c.bf16 %v2349_v31, %v2348_v26 }
 0x7ee   :  { %5237 = vmatmul.mubr.msk.bf16.vlgmr.msra.gmra.mxu1 %vm2379_vm6, %v2350_v33 }
 0x7ef   :  { %5256 = vmatprep.mubr.msk.bf16.mxu1 %vm5599_vm0, %v5598_v0 }
 0x8ae   :  { %v2417_v41 = vpop.f32.mrf.mxu1 }
 0x8af   :  { %v2418_v42 = vadd.f32 %v2417_v41, %v2354_v39 }
 0x8b0   :  { %v5238_v32 = vpop.f32.mrf.mxu1 }
 0x8b1   :  { %v2424_v36 = vadd.f32 %v2418_v42, %v2285_v20  ;;  %v2461_v20 = vrot.slane %v6100_v35, %v2460_v10 }
 0x8b2   :  { %v2420_v37 = vpop.f32.mrf.mxu1 }
 0x8b3   :  { %v2421_v43 = vadd.f32 %v2420_v37, %v2354_v39  ;;  %v2426_v16 = vsel %vm94_vm1, %v2424_v36, 0.0 }
 0x8b4   :  { %2427 = vadd.xlane.f32.xlu0 %v2426_v16  ;;  %v5239_v44 = vpop.f32.mrf.mxu1 }
 0x8b5   :  { %v2425_v46 = vadd.f32 %v2421_v43, %v2286_v21 }
 0x8b7   :  { %v2429_v51 = vsel %vm94_vm1, %v2425_v46, 0.0 }
 0x8b8   :  { %2430 = vadd.xlane.f32.xlu1 %v2429_v51 }
 0x93d   :  { %v2428_v15 = vpop.xlane.xlu0 %2427 }
 0x93e   :  { %v2432_v52 = vmul.f32 0.03125, %v2428_v15 }
 0x940   :  { %v2434_v53 = vsub.f32 %v2424_v36, %v2432_v52 }
 0x941   :  { %v2431_v54 = vpop.xlane.xlu1 %2430 }
 0x942   :  { %v2433_v55 = vmul.f32 0.03125, %v2431_v54  ;;  %v2436_v47 = vmul.f32 %v2434_v53, %v2434_v53 }
 0x944   :  { %v2435_v48 = vsub.f32 %v2425_v46, %v2433_v55  ;;  %v2438_v49 = vsel %vm94_vm1, %v2436_v47, 0.0 }
 0x945   :  { %2439 = vadd.xlane.f32.xlu0 %v2438_v49 }
 0x946   :  { %v2437_v25 = vmul.f32 %v2435_v48, %v2435_v48 }
 0x948   :  { %v2441_v56 = vsel %vm94_vm1, %v2437_v25, 0.0 }
 0x949   :  { %2442 = vadd.xlane.f32.xlu1 %v2441_v56 }
 0x9ce   :  { %v2440_v58 = vpop.xlane.xlu0 %2439 }
 0x9cf   :  { %v2444_v1 = vmul.f32 0.03125, %v2440_v58 }
 0x9d1   :  { %v2446_v62 = vadd.f32 1e-05, %v2444_v1 }
 0x9d2   :  { %v2443_v3 = vpop.xlane.xlu1 %2442 }
 0x9d3   :  { %5480 = vrsqrt.f32 %v2446_v62  ;;  %v2445_v12 = vmul.f32 0.03125, %v2443_v3 }
 0x9d5   :  { %v2447_v4 = vadd.f32 1e-05, %v2445_v12 }
 0x9d7   :  { %5482 = vrsqrt.f32 %v2447_v4 }
 0x9e0   :  { %v5481_v5 = vpop.eup %5480 }
 0x9e1   :  { %v2450_v6 = vmul.f32 %v5481_v5, %v2434_v53 }
 0x9e3   :  { %v2456_v19 = vmul.f32 %v2455_v9, %v2450_v6 }
 0x9e4   :  { %v5483_v11 = vpop.eup %5482 }
 0x9e5   :  { %v2451_v13 = vmul.f32 %v5483_v11, %v2435_v48  ;;  %v6175_v22 = vadd.f32 %v2461_v20, %v2456_v19 }
 0x9e7   :  { %v2457_v21 = vmul.f32 %v2455_v9, %v2451_v13 }
 0x9e9   :  { %v6177_v23 = vadd.f32 %v2461_v20, %v2457_v21 }
 0x9eb   :  { %v2488_v63 = vpack.c.bf16 %v6177_v23, %v6175_v22 }
 0x9ed   :  { %5245 = vmatmul.mubr.msk.bf16.vlgmr.msra.gmra.mxu0 %vm94_vm1, %v2488_v63 }
 0x9ee   :  { %5250 = vmatprep.mubr.msk.bf16.mxu0 %vm5599_vm0, %v5598_v0 }
 0xaad   :  { %v2542_v24 = vpop.f32.mrf.mxu0 }
 0xaae   :  { %v6186_v59 = vadd.f32 %v2542_v24, %v2492_v17 }
 0xaaf   :  { %v5246_v35 = vpop.f32.mrf.mxu0 }
 0xab0   :  { %2575 = vrot.lane.b32.xlu1 %v6186_v59, %s5600_s11  ;;  %2569 = vrot.lane.b32.xlu0 %v6186_v59, %s5601_s12 }
 0xab1   :  { %v2545_v18 = vpop.f32.mrf.mxu0 }
 0xab2   :  { %v6192_v2 = vadd.f32 %v2545_v18, %v2492_v17 }
 0xab3   :  { %v5247_v28 = vpop.f32.mrf.mxu0 }
 0xab4   :  { %2581 = vrot.lane.b32.xlu1 %v6186_v59, %s5602_s13  ;;  %2577 = vrot.lane.b32.xlu0 %v6192_v2, %s5600_s11 }
 0xab8   :  { %2587 = vrot.lane.b32.xlu1 %v6186_v59, %s5603_s14  ;;  %2583 = vrot.lane.b32.xlu0 %v6192_v2, %s5602_s13 }
 0xabc   :  { %2551 = vrot.lane.b32.xlu1 %v6186_v59, %s5604_s15  ;;  %2589 = vrot.lane.b32.xlu0 %v6192_v2, %s5603_s14 }
 0xac0   :  { %2553 = vrot.lane.b32.xlu0 %v6192_v2, %s5604_s15  ;;  %2571 = vrot.lane.b32.xlu1 %v6192_v2, %s5601_s12 }
 0xac4   :  { %2559 = vrot.lane.b32.xlu0 %v6192_v2, %s5605_s16  ;;  %2557 = vrot.lane.b32.xlu1 %v6186_v59, %s5605_s16 }
 0xac8   :  { %2565 = vrot.lane.b32.xlu0 %v6192_v2, %s5606_s17  ;;  %2563 = vrot.lane.b32.xlu1 %v6186_v59, %s5606_s17 }
 0xacc   :  { %2593 = vrot.lane.b32.xlu0 %v6186_v59, %s5607_s18  ;;  %2599 = vrot.lane.b32.xlu1 %v6186_v59, %s5608_s19 }
 0xad0   :  { %2601 = vrot.lane.b32.xlu0 %v6192_v2, %s5608_s19  ;;  %2595 = vrot.lane.b32.xlu1 %v6192_v2, %s5607_s18 }
 0xb22   :  { %v2576_v8 = vpop.permute.xlu1 %2575  ;;  %v2570_v29 = vpop.permute.xlu0 %2569 }
 0xb26   :  { %v2582_v26 = vpop.permute.xlu1 %2581  ;;  %v2578_v31 = vpop.permute.xlu0 %2577 }
 0xb27   :  { %v2649_v33 = vcombine.low %v2570_v29, %v2582_v26  ;;  %v2650_v39 = vcombine.high %v2570_v29, %v2582_v26 }
 0xb29   :  { %v2657_v37 = vrot.slane %v2649_v33, %v5726_v27  ;;  %v2664_v43 = vrot.slane %v2650_v39, %v5726_v27 }
 0xb2a   :  { %v2588_v41 = vpop.permute.xlu1 %2587  ;;  %v2584_v42 = vpop.permute.xlu0 %2583 }
 0xb2b   :  { %v2665_v32 = vcombine.low %v2576_v8, %v2588_v41  ;;  %v2666_v36 = vcombine.high %v2576_v8, %v2588_v41 }
 0xb2d   :  { %v2673_v16 = vrot.slane %v2665_v32, %v5726_v27  ;;  %v2680_v44 = vrot.slane %v2666_v36, %v5726_v27 }
 0xb2e   :  { %v2552_v46 = vpop.permute.xlu1 %2551  ;;  %v2590_v51 = vpop.permute.xlu0 %2589 }
 0xb2f   :  { %v2713_v15 = vcombine.low %v2657_v37, %v2673_v16  ;;  %v2714_v52 = vcombine.high %v2657_v37, %v2673_v16  ;;  %v2729_v53 = vcombine.low %v2664_v43, %v2680_v44  ;;  %v2730_v54 = vcombine.high %v2664_v43, %v2680_v44 }
 0xb30   :  { %v2869_v55 = vcombine.low %v2578_v31, %v2590_v51  ;;  %v2870_v47 = vcombine.high %v2578_v31, %v2590_v51 }
 0xb31   :  { %v2721_v48 = vrot.slane %v2713_v15, %v5729_v34  ;;  %v2728_v49 = vrot.slane %v2714_v52, %v5729_v34  ;;  %v2737_v25 = vrot.slane %v2729_v53, %v5729_v34  ;;  %v2744_v56 = vrot.slane %v2730_v54, %v5729_v34 }
 0xb32   :  { %v2554_v50 = vpop.permute.xlu0 %2553  ;;  %v2572_v57 = vpop.permute.xlu1 %2571  ;;  %v2877_v9 = vrot.slane %v2869_v55, %v5726_v27  ;;  %v2884_v11 = vrot.slane %v2870_v47, %v5726_v27 }
 0xb33   :  { %v4966_v58 = vcombine.low %v2721_v48, %v2728_v49  ;;  %v4968_v1 = vcombine.high %v2721_v48, %v2728_v49  ;;  %v4970_v62 = vcombine.low %v2737_v25, %v2744_v56  ;;  %v4972_v3 = vcombine.high %v2737_v25, %v2744_v56 }
 0xb34   :  { %v2853_v12 = vcombine.low %v2572_v57, %v2584_v42  ;;  %v2854_v4 = vcombine.high %v2572_v57, %v2584_v42 }
 0xb35   :  { %v6235_v5 = vrot.slane %v4966_v58, %v5726_v27  ;;  %v6238_v6 = vrot.slane %v4968_v1, %v5726_v27  ;;  %v6243_v13 = vrot.slane %v4970_v62, %v5726_v27  ;;  %v6246_v19 = vrot.slane %v4972_v3, %v5726_v27 }
 0xb36   :  { %v2861_v20 = vrot.slane %v2853_v12, %v5726_v27  ;;  %v2868_v21 = vrot.slane %v2854_v4, %v5726_v27  ;;  %v2560_v63 = vpop.permute.xlu0 %2559  ;;  %v2558_v61 = vpop.permute.xlu1 %2557 }
 0xb37   :  { %v2821_v17 = vcombine.low %v6192_v2, %v2560_v63  ;;  %v2822_v24 = vcombine.high %v6192_v2, %v2560_v63  ;;  %v2617_v35 = vcombine.low %v6186_v59, %v2558_v61  ;;  %v2618_v18 = vcombine.high %v6186_v59, %v2558_v61 }
 0xb38   :  { %v2917_v28 = vcombine.low %v2861_v20, %v2877_v9  ;;  %v2918_v8 = vcombine.high %v2861_v20, %v2877_v9  ;;  %v2933_v29 = vcombine.low %v2868_v21, %v2884_v11  ;;  %v2934_v26 = vcombine.high %v2868_v21, %v2884_v11 }
 0xb39   :  { %v2829_v31 = vrot.slane %v2821_v17, %v5726_v27  ;;  %v2836_v33 = vrot.slane %v2822_v24, %v5726_v27  ;;  %v2625_v39 = vrot.slane %v2617_v35, %v5726_v27  ;;  %v2632_v41 = vrot.slane %v2618_v18, %v5726_v27 }
 0xb3a   :  { %v2925_v42 = vrot.slane %v2917_v28, %v5729_v34  ;;  %v2932_v32 = vrot.slane %v2918_v8, %v5729_v34  ;;  %v2941_v36 = vrot.slane %v2933_v29, %v5729_v34  ;;  %v2948_v37 = vrot.slane %v2934_v26, %v5729_v34  ;;  %v2566_v43 = vpop.permute.xlu0 %2565  ;;  %v2564_v16 = vpop.permute.xlu1 %2563 }
 0xb3b   :  { %v2837_v44 = vcombine.low %v2554_v50, %v2566_v43  ;;  %v2838_v51 = vcombine.high %v2554_v50, %v2566_v43  ;;  %v2633_v15 = vcombine.low %v2552_v46, %v2564_v16  ;;  %v2634_v52 = vcombine.high %v2552_v46, %v2564_v16 }
 0xb3c   :  { %v4974_v53 = vcombine.low %v2925_v42, %v2932_v32  ;;  %v4976_v54 = vcombine.high %v2925_v42, %v2932_v32  ;;  %v4978_v55 = vcombine.low %v2941_v36, %v2948_v37  ;;  %v4980_v47 = vcombine.high %v2941_v36, %v2948_v37 }
 0xb3d   :  { %v2845_v48 = vrot.slane %v2837_v44, %v5726_v27  ;;  %v2852_v49 = vrot.slane %v2838_v51, %v5726_v27  ;;  %v2641_v25 = vrot.slane %v2633_v15, %v5726_v27  ;;  %v2648_v56 = vrot.slane %v2634_v52, %v5726_v27 }
 0xb3e   :  { %v6267_v57 = vrot.slane %v4974_v53, %v5726_v27  ;;  %v6270_v58 = vrot.slane %v4976_v54, %v5726_v27  ;;  %v6273_v46 = vrot.slane %v4978_v55, %v5726_v27  ;;  %v6276_v50 = vrot.slane %v4980_v47, %v5726_v27 }
 0xb3f   :  { %v2885_v1 = vcombine.low %v2829_v31, %v2845_v48  ;;  %v2886_v62 = vcombine.high %v2829_v31, %v2845_v48  ;;  %v2901_v3 = vcombine.low %v2836_v33, %v2852_v49  ;;  %v2902_v12 = vcombine.high %v2836_v33, %v2852_v49 }
 0xb40   :  { %v2681_v4 = vcombine.low %v2625_v39, %v2641_v25  ;;  %v2682_v9 = vcombine.high %v2625_v39, %v2641_v25  ;;  %v2697_v11 = vcombine.low %v2632_v41, %v2648_v56  ;;  %v2698_v20 = vcombine.high %v2632_v41, %v2648_v56 }
 0xb41   :  { %v2893_v21 = vrot.slane %v2885_v1, %v5729_v34  ;;  %v2900_v63 = vrot.slane %v2886_v62, %v5729_v34  ;;  %v2909_v61 = vrot.slane %v2901_v3, %v5729_v34  ;;  %v2916_v17 = vrot.slane %v2902_v12, %v5729_v34 }
 0xb42   :  { %v2689_v24 = vrot.slane %v2681_v4, %v5729_v34  ;;  %v2696_v35 = vrot.slane %v2682_v9, %v5729_v34  ;;  %v2705_v18 = vrot.slane %v2697_v11, %v5729_v34  ;;  %v2712_v28 = vrot.slane %v2698_v20, %v5729_v34 }
 0xb43   :  { %v4973_v8 = vcombine.low %v2893_v21, %v2900_v63  ;;  %v4975_v29 = vcombine.high %v2893_v21, %v2900_v63  ;;  %v4977_v26 = vcombine.low %v2909_v61, %v2916_v17  ;;  %v4979_v31 = vcombine.high %v2909_v61, %v2916_v17 }
 0xb44   :  { %v4965_v33 = vcombine.low %v2689_v24, %v2696_v35  ;;  %v4967_v39 = vcombine.high %v2689_v24, %v2696_v35  ;;  %v4969_v41 = vcombine.low %v2705_v18, %v2712_v28  ;;  %v4971_v42 = vcombine.high %v2705_v18, %v2712_v28 }
 0xb45   :  { %v6287_v32 = vrot.slane %v4973_v8, %v5726_v27  ;;  %v6290_v36 = vrot.slane %v4975_v29, %v5726_v27  ;;  %v6293_v37 = vrot.slane %v4977_v26, %v5726_v27  ;;  %v6296_v43 = vrot.slane %v4979_v31, %v5726_v27 }
 0xb46   :  { %v6299_v16 = vrot.slane %v4965_v33, %v5726_v27  ;;  %v6302_v44 = vrot.slane %v4967_v39, %v5726_v27  ;;  %v6305_v51 = vrot.slane %v4969_v41, %v5726_v27  ;;  %v6308_v15 = vrot.slane %v4971_v42, %v5726_v27 }
 0xb47   :  { %v3225_v52 = vcombine.low %v6287_v32, %v6290_v36  ;;  %v3257_v53 = vcombine.low %v6293_v37, %v6296_v43  ;;  %v3105_v47 = vcombine.low %v6235_v5, %v6238_v6  ;;  %v3137_v48 = vcombine.low %v6243_v13, %v6246_v19 }
 0xb48   :  { %v3089_v54 = vcombine.low %v6299_v16, %v6302_v44  ;;  %v3121_v55 = vcombine.low %v6305_v51, %v6308_v15  ;;  %v3241_v49 = vcombine.low %v6267_v57, %v6270_v58  ;;  %v3273_v25 = vcombine.low %v6273_v46, %v6276_v50 }
 0xb49   :  { %v3233_v62 = vrot.slane %v3225_v52, %v5729_v34  ;;  %v3265_v3 = vrot.slane %v3257_v53, %v5729_v34  ;;  %v3113_v12 = vrot.slane %v3105_v47, %v5729_v34  ;;  %v3145_v4 = vrot.slane %v3137_v48, %v5729_v34 }
 0xb4a   :  { %v3097_v56 = vrot.slane %v3089_v54, %v5729_v34  ;;  %v3129_v1 = vrot.slane %v3121_v55, %v5729_v34  ;;  %v3249_v9 = vrot.slane %v3241_v49, %v5729_v34  ;;  %v3281_v11 = vrot.slane %v3273_v25, %v5729_v34 }
 0xb4b   :  { %v3157_v20 = vcombine.low %v3113_v12, %v3145_v4  ;;  %v3289_v24 = vcombine.low %v3233_v62, %v3265_v3  ;;  %v3158_v35 = vcombine.high %v3113_v12, %v3145_v4  ;;  %v3106_v28 = vcombine.high %v6235_v5, %v6238_v6 }
 0xb4c   :  { %v3293_v21 = vcombine.low %v3249_v9, %v3281_v11  ;;  %v3153_v17 = vcombine.low %v3097_v56, %v3129_v1  ;;  %v3294_v18 = vcombine.high %v3249_v9, %v3281_v11  ;;  %v3138_v8 = vcombine.high %v6243_v13, %v6246_v19 }
 0xb4d   :  { %v3441_v63 = vpack.c.bf16 %v3157_v20, %v3157_v20  ;;  %v3242_v31 = vcombine.high %v6267_v57, %v6270_v58  ;;  %v3274_v33 = vcombine.high %v6273_v46, %v6276_v50  ;;  %v3434_v6 = vpack.c.bf16 %v3289_v24, %v3289_v24 }
 0xb4e   :  { %v3442_v61 = vpack.c.bf16 %v3293_v21, %v3293_v21  ;;  %v3433_v5 = vpack.c.bf16 %v3153_v17, %v3153_v17  ;;  %v3443_v39 = vpack.c.bf16 %v3158_v35, %v3158_v35  ;;  %v3444_v13 = vpack.c.bf16 %v3294_v18, %v3294_v18 }
 0xb4f   :  { %v3453_v29 = vsel %vm1039_vm2, %v3441_v63, 0  ;;  %v3120_v19 = vrot.slane %v3106_v28, %v5729_v34  ;;  %v3152_v41 = vrot.slane %v3138_v8, %v5729_v34  ;;  %v3256_v42 = vrot.slane %v3242_v31, %v5729_v34 }
 0xb50   :  { %v3499_v26 = vsel %vm1039_vm2, %v3442_v61, 0  ;;  %5249 = vmatpush3.bf16.xpose.msra.mxu0 %v3453_v29  ;;  %v3288_v57 = vrot.slane %v3274_v33, %v5729_v34  ;;  %v3545_v58 = vsel %vm1039_vm2, %v3443_v39, 0  ;;  %v3591_v46 = vsel %vm1039_vm2, %v3444_v13, 0 }
 0xb51   :  { %5255 = vmatpush3.bf16.xpose.msra.mxu1 %v3499_v26  ;;  %5260 = vmatprep.subr.bf16.mxu0 %v5598_v0  ;;  %v3159_v50 = vcombine.low %v3120_v19, %v3152_v41  ;;  %v3226_v53 = vcombine.high %v6287_v32, %v6290_v36  ;;  %v3154_v54 = vcombine.high %v3097_v56, %v3129_v1 }
 0xb52   :  { %5266 = vmatprep.subr.bf16.mxu1 %v5598_v0  ;;  %v3295_v52 = vcombine.low %v3256_v42, %v3288_v57  ;;  %v3290_v55 = vcombine.high %v3233_v62, %v3265_v3  ;;  %v3258_v47 = vcombine.high %v6293_v37, %v6296_v43  ;;  %v3090_v48 = vcombine.high %v6299_v16, %v6302_v44 }
 0xb53   :  { %v3122_v49 = vcombine.high %v6305_v51, %v6308_v15  ;;  %v3445_v32 = vpack.c.bf16 %v3159_v50, %v3159_v50  ;;  %v3435_v25 = vpack.c.bf16 %v3154_v54, %v3154_v54  ;;  %v3240_v44 = vrot.slane %v3226_v53, %v5729_v34 }
 0xb54   :  { %v3446_v36 = vpack.c.bf16 %v3295_v52, %v3295_v52  ;;  %v3436_v37 = vpack.c.bf16 %v3290_v55, %v3290_v55  ;;  %v3104_v43 = vrot.slane %v3090_v48, %v5729_v34  ;;  %v3272_v51 = vrot.slane %v3258_v47, %v5729_v34 }
 0xb55   :  { %v3136_v16 = vrot.slane %v3122_v49, %v5729_v34  ;;  %v3637_v15 = vsel %vm1039_vm2, %v3445_v32, 0  ;;  %v3160_v1 = vcombine.high %v3120_v19, %v3152_v41  ;;  %v3296_v62 = vcombine.high %v3256_v42, %v3288_v57 }
 0xb56   :  { %v3683_v56 = vsel %vm1039_vm2, %v3446_v36, 0  ;;  %v3291_v12 = vcombine.low %v3240_v44, %v3272_v51  ;;  %v3292_v17 = vcombine.high %v3240_v44, %v3272_v51 }
 0xb57   :  { %5251 = vmatmul.mubr.msk.bf16.vlgmr.msra.gmra.mxu0 %vm1039_vm2, %v3433_v5  ;;  %v3155_v3 = vcombine.low %v3104_v43, %v3136_v16  ;;  %v3447_v4 = vpack.c.bf16 %v3160_v1, %v3160_v1  ;;  %v3448_v9 = vpack.c.bf16 %v3296_v62, %v3296_v62  ;;  %v3156_v61 = vcombine.high %v3104_v43, %v3136_v16 }
 0xb58   :  { %5257 = vmatmul.mubr.msk.bf16.vlgmr.msra.gmra.mxu1 %vm1039_vm2, %v3434_v6  ;;  %5261 = vmatpush3.bf16.xpose.msra.mxu0 %v3545_v58  ;;  %v3438_v20 = vpack.c.bf16 %v3291_v12, %v3291_v12  ;;  %v3440_v35 = vpack.c.bf16 %v3292_v17, %v3292_v17 }
 0xb59   :  { %5267 = vmatpush3.bf16.xpose.msra.mxu1 %v3591_v46  ;;  %5262 = vmatprep.mubr.msk.bf16.mxu0 %vm5599_vm0, %v5598_v0  ;;  %v3437_v11 = vpack.c.bf16 %v3155_v3, %v3155_v3  ;;  %v3729_v21 = vsel %vm1039_vm2, %v3447_v4, 0  ;;  %v3775_v63 = vsel %vm1039_vm2, %v3448_v9, 0  ;;  %v3439_v24 = vpack.c.bf16 %v3156_v61, %v3156_v61  ;;  %v6416_v9 = vpop.permute.xlu0 %2593 }
 0xb5a   :  { %5268 = vmatprep.mubr.msk.bf16.mxu1 %vm5599_vm0, %v5598_v0  ;;  %5272 = vmatprep.subr.bf16.mxu0 %v5598_v0 }
 0xb5b   :  { %5278 = vmatprep.subr.bf16.mxu1 %v5598_v0 }
 0xb5f   :  { %5263 = vmatmul.mubr.msk.bf16.vlgmr.msra.gmra.mxu0 %vm1039_vm2, %v3435_v25 }
 0xb60   :  { %5269 = vmatmul.mubr.msk.bf16.vlgmr.msra.gmra.mxu1 %vm1039_vm2, %v3436_v37  ;;  %5273 = vmatpush3.bf16.xpose.msra.mxu0 %v3637_v15 }
 0xb61   :  { %5279 = vmatpush3.bf16.xpose.msra.mxu1 %v3683_v56  ;;  %5274 = vmatprep.mubr.msk.bf16.mxu0 %vm5599_vm0, %v5598_v0 }
 0xb62   :  { %5280 = vmatprep.mubr.msk.bf16.mxu1 %vm5599_vm0, %v5598_v0  ;;  %5284 = vmatprep.subr.bf16.mxu0 %v5598_v0 }
 0xb63   :  { %5290 = vmatprep.subr.bf16.mxu1 %v5598_v0 }
 0xb67   :  { %5275 = vmatmul.mubr.msk.bf16.vlgmr.msra.gmra.mxu0 %vm1039_vm2, %v3437_v11  ;;  %v6418_v11 = vpop.permute.xlu1 %2599 }
 0xb68   :  { %5281 = vmatmul.mubr.msk.bf16.vlgmr.msra.gmra.mxu1 %vm1039_vm2, %v3438_v20  ;;  %5285 = vmatpush3.bf16.xpose.msra.mxu0 %v3729_v21  ;;  %v6420_v20 = vpop.permute.xlu0 %2601 }
 0xb69   :  { %5291 = vmatpush3.bf16.xpose.msra.mxu1 %v3775_v63  ;;  %5286 = vmatprep.mubr.msk.bf16.mxu0 %vm5599_vm0, %v5598_v0 }
 0xb6a   :  { %5292 = vmatprep.mubr.msk.bf16.mxu1 %vm5599_vm0, %v5598_v0  ;;  %5296 = vmatprep.subr.bf16.mxu0 %v5598_v0 }
 0xb6b   :  { %5302 = vmatprep.subr.bf16.mxu1 %v5598_v0  ;;  %v6422_v21 = vpop.permute.xlu1 %2595 }
 0xb6f   :  { %5287 = vmatmul.mubr.msk.bf16.vlgmr.msra.gmra.mxu0 %vm1039_vm2, %v3439_v24 }
 0xb70   :  { %5293 = vmatmul.mubr.msk.bf16.vlgmr.msra.gmra.mxu1 %vm1039_vm2, %v3440_v35  ;;  %5298 = vmatprep.mubr.msk.bf16.mxu0 %vm5599_vm0, %v5598_v0 }
 0xb71   :  { %5304 = vmatprep.mubr.msk.bf16.mxu1 %vm5599_vm0, %v5598_v0 }
 0xc17   :  { %v3489_v18 = vpop.f32.mrf.mxu0 }
 0xc18   :  { %v3535_v28 = vpop.f32.mrf.mxu1  ;;  %v3817_v29 = vsel %vm1039_vm2, %v3489_v18, -inf }
 0xc19   :  { %v3820_v8 = vsel %vm1039_vm2, %v3535_v28, -inf  ;;  %3818 = vmax.xlane.f32.xlu1 %v3817_v29  ;;  %v5252_v31 = vpop.f32.mrf.mxu0 }
 0xc1a   :  { %3821 = vmax.xlane.f32.xlu0 %v3820_v8  ;;  %v5258_v26 = vpop.f32.mrf.mxu1 }
 0xc1b   :  { %v3492_v33 = vpop.f32.mrf.mxu0 }
 0xc1c   :  { %v3538_v5 = vpop.f32.mrf.mxu1 }
 0xc1d   :  { %v5253_v6 = vpop.f32.mrf.mxu0 }
 0xc1e   :  { %v5259_v39 = vpop.f32.mrf.mxu1 }
 0xc1f   :  { %v6400_v13 = vpop.f32.mrf.mxu0 }
 0xc20   :  { %v6402_v19 = vpop.f32.mrf.mxu1  ;;  %v3823_v42 = vsel %vm1039_vm2, %v6400_v13, -inf }
 0xc21   :  { %v3826_v41 = vsel %vm1039_vm2, %v6402_v19, -inf  ;;  %3824 = vmax.xlane.f32.xlu0 %v3823_v42  ;;  %v5264_v58 = vpop.f32.mrf.mxu0 }
 0xc22   :  { %v5270_v57 = vpop.f32.mrf.mxu1  ;;  %3827 = vmax.xlane.f32.xlu1 %v3826_v41 }
 0xc23   :  { %v3584_v46 = vpop.f32.mrf.mxu0 }
 0xc24   :  { %v3630_v50 = vpop.f32.mrf.mxu1 }
 0xc25   :  { %v5265_v52 = vpop.f32.mrf.mxu0 }
 0xc26   :  { %v5271_v53 = vpop.f32.mrf.mxu1 }
 0xc27   :  { %v3673_v54 = vpop.f32.mrf.mxu0 }
 0xc28   :  { %v3719_v55 = vpop.f32.mrf.mxu1  ;;  %v3829_v48 = vsel %vm1039_vm2, %v3673_v54, -inf }
 0xc29   :  { %v3832_v47 = vsel %vm1039_vm2, %v3719_v55, -inf  ;;  %3830 = vmax.xlane.f32.xlu0 %v3829_v48  ;;  %v5276_v32 = vpop.f32.mrf.mxu0 }
 0xc2a   :  { %v5282_v49 = vpop.f32.mrf.mxu1  ;;  %3833 = vmax.xlane.f32.xlu1 %v3832_v47 }
 0xc2b   :  { %v3676_v36 = vpop.f32.mrf.mxu0 }
 0xc2c   :  { %v3722_v25 = vpop.f32.mrf.mxu1 }
 0xc2d   :  { %v5277_v37 = vpop.f32.mrf.mxu0 }
 0xc2e   :  { %v5283_v43 = vpop.f32.mrf.mxu1 }
 0xc2f   :  { %v3765_v16 = vpop.f32.mrf.mxu0 }
 0xc30   :  { %v3811_v44 = vpop.f32.mrf.mxu1  ;;  %v3835_v15 = vsel %vm1039_vm2, %v3765_v16, -inf }
 0xc31   :  { %v3838_v51 = vsel %vm1039_vm2, %v3811_v44, -inf  ;;  %3836 = vmax.xlane.f32.xlu0 %v3835_v15  ;;  %v5288_v1 = vpop.f32.mrf.mxu0 }
 0xc32   :  { %v5294_v56 = vpop.f32.mrf.mxu1  ;;  %3839 = vmax.xlane.f32.xlu1 %v3838_v51 }
 0xc33   :  { %v3768_v62 = vpop.f32.mrf.mxu0 }
 0xc34   :  { %v3814_v3 = vpop.f32.mrf.mxu1 }
 0xc35   :  { %v5289_v12 = vpop.f32.mrf.mxu0 }
 0xc36   :  { %v5295_v4 = vpop.f32.mrf.mxu1 }
 0xc43   :  { %2605 = vrot.lane.b32.xlu1 %v6186_v59, %s5611_s20 }
 0xc47   :  { %2607 = vrot.lane.b32.xlu0 %v6192_v2, %s5611_s20 }
 0xca2   :  { %v3819_v61 = vpop.xlane.xlu1 %3818 }
 0xca3   :  { %v3822_v63 = vpop.xlane.xlu0 %3821  ;;  %v3841_v24 = vsub.f32 %v3489_v18, %v3819_v61 }
 0xca4   :  { %v3842_v17 = vsub.f32 %v3535_v28, %v3822_v63 }
 0xca5   :  { %v3849_v8 = vmul.f32 1.442695, %v3841_v24 }
 0xca6   :  { %v3851_v35 = vmul.f32 1.442695, %v3842_v17 }
 0xca8   :  { %5484 = vpow2.f32 %v3851_v35 }
 0xca9   :  { %5486 = vpow2.f32 %v3849_v8 }
 0xcaa   :  { %v3825_v28 = vpop.xlane.xlu0 %3824 }
 0xcab   :  { %v3828_v18 = vpop.xlane.xlu1 %3827  ;;  %v3843_v5 = vsub.f32 %v6400_v13, %v3825_v28 }
 0xcac   :  { %v3844_v6 = vsub.f32 %v6402_v19, %v3828_v18 }
 0xcad   :  { %v3853_v42 = vmul.f32 1.442695, %v3843_v5 }
 0xcae   :  { %v3855_v58 = vmul.f32 1.442695, %v3844_v6 }
 0xcaf   :  { %5488 = vpow2.f32 %v3853_v42 }
 0xcb0   :  { %5490 = vpow2.f32 %v3855_v58 }
 0xcb2   :  { %v3831_v41 = vpop.xlane.xlu0 %3830 }
 0xcb3   :  { %v3834_v39 = vpop.xlane.xlu1 %3833  ;;  %v3845_v46 = vsub.f32 %v3673_v54, %v3831_v41 }
 0xcb4   :  { %v3846_v57 = vsub.f32 %v3719_v55, %v3834_v39 }
 0xcb5   :  { %v6424_v29 = vpop.eup %5484  ;;  %v3857_v47 = vmul.f32 1.442695, %v3845_v46 }
 0xcb6   :  { %v6426_v26 = vpop.eup %5486  ;;  %v3868_v31 = vsel %vm1039_vm2, %v6424_v29, 0.0  ;;  %v3859_v53 = vmul.f32 1.442695, %v3846_v57 }
 0xcb7   :  { %3869 = vadd.xlane.f32.xlu1 %v3868_v31  ;;  %v3865_v33 = vsel %vm1039_vm2, %v6426_v26, 0.0 }
 0xcb8   :  { %3866 = vadd.xlane.f32.xlu0 %v3865_v33  ;;  %5492 = vpow2.f32 %v3859_v53 }
 0xcb9   :  { %5494 = vpow2.f32 %v3857_v47 }
 0xcba   :  { %v3837_v52 = vpop.xlane.xlu0 %3836 }
 0xcbb   :  { %v3840_v50 = vpop.xlane.xlu1 %3839 }
 0xcbc   :  { %v6438_v19 = vpop.eup %5488 }
 0xcbd   :  { %v6440_v49 = vpop.eup %5490  ;;  %v3871_v54 = vsel %vm1039_vm2, %v6438_v19, 0.0 }
 0xcbe   :  { %v3874_v32 = vsel %vm1039_vm2, %v6440_v49, 0.0  ;;  %v2608_v56 = vpop.permute.xlu0 %2607 }
 0xcbf   :  { %v2606_v15 = vpop.permute.xlu1 %2605  ;;  %v2957_v4 = vcombine.low %v6422_v21, %v2608_v56  ;;  %v2958_v63 = vcombine.high %v6422_v21, %v2608_v56 }
 0xcc0   :  { %v2753_v3 = vcombine.low %v6416_v9, %v2606_v15  ;;  %v2754_v12 = vcombine.high %v6416_v9, %v2606_v15 }
 0xcc1   :  { %v2965_v9 = vrot.slane %v2957_v4, %v5726_v27  ;;  %v2972_v5 = vrot.slane %v2958_v63, %v5726_v27 }
 0xcc2   :  { %v2761_v8 = vrot.slane %v2753_v3, %v5726_v27  ;;  %v2768_v31 = vrot.slane %v2754_v12, %v5726_v27 }
 0xcc5   :  { %v6444_v55 = vpop.eup %5492 }
 0xcc6   :  { %v6448_v36 = vpop.eup %5494  ;;  %v3880_v25 = vsel %vm1039_vm2, %v6444_v55, 0.0 }
 0xcc7   :  { %v3877_v43 = vsel %vm1039_vm2, %v6448_v36, 0.0 }
 0xcc8   :  { %2611 = vrot.lane.b32.xlu1 %v6186_v59, %s5612_s21  ;;  %v3848_v59 = vsub.f32 %v3811_v44, %v3840_v50 }
 0xcca   :  { %v3863_v48 = vmul.f32 1.442695, %v3848_v59 }
 0xccc   :  { %5496 = vpow2.f32 %v3863_v48 }
 0xcce   :  { %2613 = vrot.lane.b32.xlu0 %v6192_v2, %s5612_s21  ;;  %v3847_v2 = vsub.f32 %v3765_v16, %v3837_v52 }
 0xcd0   :  { %v3861_v13 = vmul.f32 1.442695, %v3847_v2 }
 0xcd2   :  { %5498 = vpow2.f32 %v3861_v13 }
 0xcd9   :  { %v6452_v37 = vpop.eup %5496 }
 0xcda   :  { %v3886_v44 = vsel %vm1039_vm2, %v6452_v37, 0.0 }
 0xcdf   :  { %v6456_v16 = vpop.eup %5498 }
 0xce0   :  { %v3883_v51 = vsel %vm1039_vm2, %v6456_v16, 0.0 }
 0xcec   :  { %3872 = vadd.xlane.f32.xlu1 %v3871_v54 }
 0xced   :  { %3875 = vadd.xlane.f32.xlu0 %v3874_v32 }
 0xcf0   :  { %3881 = vadd.xlane.f32.xlu1 %v3880_v25 }
 0xcf1   :  { %3878 = vadd.xlane.f32.xlu0 %v3877_v43 }
 0xcf4   :  { %3887 = vadd.xlane.f32.xlu1 %v3886_v44 }
 0xcf5   :  { %3884 = vadd.xlane.f32.xlu0 %v3883_v51 }
 0xd40   :  { %v3870_v1 = vpop.xlane.xlu1 %3869 }
 0xd41   :  { %v3867_v62 = vpop.xlane.xlu0 %3866 }
 0xd42   :  { %5500 = vrcp.f32 %v3867_v62 }
 0xd43   :  { %5502 = vrcp.f32 %v3870_v1 }
 0xd44   :  { %v2612_v61 = vpop.permute.xlu1 %2611 }
 0xd45   :  { %v2769_v17 = vcombine.low %v6418_v11, %v2612_v61  ;;  %v2770_v24 = vcombine.high %v6418_v11, %v2612_v61  ;;  %v2614_v35 = vpop.permute.xlu0 %2613 }
 0xd46   :  { %v2973_v33 = vcombine.low %v6420_v20, %v2614_v35  ;;  %v2974_v18 = vcombine.high %v6420_v20, %v2614_v35 }
 0xd47   :  { %v2777_v28 = vrot.slane %v2769_v17, %v5726_v27  ;;  %v2784_v21 = vrot.slane %v2770_v24, %v5726_v27 }
 0xd48   :  { %v2981_v11 = vrot.slane %v2973_v33, %v5726_v27  ;;  %v2988_v6 = vrot.slane %v2974_v18, %v5726_v27 }
 0xd49   :  { %v2785_v39 = vcombine.low %v2761_v8, %v2777_v28  ;;  %v2786_v41 = vcombine.high %v2761_v8, %v2777_v28  ;;  %v2801_v42 = vcombine.low %v2768_v31, %v2784_v21  ;;  %v2802_v57 = vcombine.high %v2768_v31, %v2784_v21 }
 0xd4a   :  { %v2989_v58 = vcombine.low %v2965_v9, %v2981_v11  ;;  %v2990_v20 = vcombine.high %v2965_v9, %v2981_v11  ;;  %v3005_v46 = vcombine.low %v2972_v5, %v2988_v6  ;;  %v3006_v50 = vcombine.high %v2972_v5, %v2988_v6 }
 0xd4b   :  { %v2793_v52 = vrot.slane %v2785_v39, %v5729_v34  ;;  %v2800_v53 = vrot.slane %v2786_v41, %v5729_v34  ;;  %v2809_v59 = vrot.slane %v2801_v42, %v5729_v34  ;;  %v2816_v47 = vrot.slane %v2802_v57, %v5729_v34 }
 0xd4c   :  { %v2997_v2 = vrot.slane %v2989_v58, %v5729_v34  ;;  %v3004_v48 = vrot.slane %v2990_v20, %v5729_v34  ;;  %v3013_v13 = vrot.slane %v3005_v46, %v5729_v34  ;;  %v3020_v54 = vrot.slane %v3006_v50, %v5729_v34 }
 0xd4d   :  { %v3297_v32 = vcombine.low %v2793_v52, %v2800_v53  ;;  %v4981_v25 = vcombine.high %v2793_v52, %v2800_v53  ;;  %v3313_v43 = vcombine.low %v2809_v59, %v2816_v47  ;;  %v4982_v44 = vcombine.high %v2809_v59, %v2816_v47 }
 0xd4e   :  { %v3365_v51 = vcombine.low %v2997_v2, %v3004_v48  ;;  %v4983_v15 = vcombine.high %v2997_v2, %v3004_v48  ;;  %v3381_v56 = vcombine.low %v3013_v13, %v3020_v54  ;;  %v4984_v1 = vcombine.high %v3013_v13, %v3020_v54 }
 0xd4f   :  { %v3304_v62 = vrot.slane %v3297_v32, %v5726_v27  ;;  %v3312_v3 = vrot.slane %v4981_v25, %v5726_v27  ;;  %v3320_v12 = vrot.slane %v3313_v43, %v5726_v27  ;;  %v3328_v4 = vrot.slane %v4982_v44, %v5726_v27  ;;  %v5501_v28 = vpop.eup %5500 }
 0xd50   :  { %v3372_v63 = vrot.slane %v3365_v51, %v5726_v27  ;;  %v3380_v61 = vrot.slane %v4983_v15, %v5726_v27  ;;  %v3388_v17 = vrot.slane %v3381_v56, %v5726_v27  ;;  %v3396_v24 = vrot.slane %v4984_v1, %v5726_v27  ;;  %v5503_v11 = vpop.eup %5502 }
 0xd51   :  { %v3329_v35 = vcombine.low %v3304_v62, %v3312_v3  ;;  %v3345_v8 = vcombine.low %v3320_v12, %v3328_v4  ;;  %v3897_v58 = vmul.f32 %v5501_v28, %v6426_v26  ;;  %v3898_v46 = vmul.f32 %v5503_v11, %v6424_v29 }
 0xd52   :  { %v3397_v31 = vcombine.low %v3372_v63, %v3380_v61  ;;  %v3413_v33 = vcombine.low %v3388_v17, %v3396_v24  ;;  %v3330_v54 = vcombine.high %v3304_v62, %v3312_v3  ;;  %v3346_v32 = vcombine.high %v3320_v12, %v3328_v4 }
 0xd53   :  { %v3337_v18 = vrot.slane %v3329_v35, %v5729_v34  ;;  %v3353_v9 = vrot.slane %v3345_v8, %v5729_v34  ;;  %v3905_v47 = vpack.c.bf16 %v3897_v58, %v3897_v58  ;;  %v3906_v2 = vpack.c.bf16 %v3898_v46, %v3898_v46 }
 0xd54   :  { %v3405_v21 = vrot.slane %v3397_v31, %v5729_v34  ;;  %v3421_v5 = vrot.slane %v3413_v33, %v5729_v34  ;;  %v3398_v43 = vcombine.high %v3372_v63, %v3380_v61  ;;  %v3414_v44 = vcombine.high %v3388_v17, %v3396_v24 }
 0xd55   :  { %v3361_v6 = vcombine.low %v3337_v18, %v3353_v9  ;;  %v3362_v39 = vcombine.high %v3337_v18, %v3353_v9  ;;  %v3344_v15 = vrot.slane %v3330_v54, %v5729_v34  ;;  %v3360_v56 = vrot.slane %v3346_v32, %v5729_v34 }
 0xd56   :  { %v3429_v41 = vcombine.low %v3405_v21, %v3421_v5  ;;  %v3430_v42 = vcombine.high %v3405_v21, %v3421_v5  ;;  %v3412_v1 = vrot.slane %v3398_v43, %v5729_v34  ;;  %v3428_v35 = vrot.slane %v3414_v44, %v5729_v34 }
 0xd57   :  { %v3913_v57 = vpack.c.bf16 %v3361_v6, %v3361_v6  ;;  %v3915_v52 = vpack.c.bf16 %v3362_v39, %v3362_v39  ;;  %v3363_v33 = vcombine.low %v3344_v15, %v3360_v56  ;;  %v3364_v5 = vcombine.high %v3344_v15, %v3360_v56 }
 0xd58   :  { %v3914_v20 = vpack.c.bf16 %v3429_v41, %v3429_v41  ;;  %v3916_v59 = vpack.c.bf16 %v3430_v42, %v3430_v42  ;;  %v3431_v18 = vcombine.low %v3412_v1, %v3428_v35  ;;  %v3432_v6 = vcombine.high %v3412_v1, %v3428_v35 }
 0xd59   :  { %v3925_v50 = vsel %vm1515_vm3, %v3913_v57, 0  ;;  %v4017_v26 = vsel %vm1515_vm3, %v3915_v52, 0  ;;  %v3917_v4 = vpack.c.bf16 %v3363_v33, %v3363_v33  ;;  %v3919_v39 = vpack.c.bf16 %v3364_v5, %v3364_v5 }
 0xd5a   :  { %5297 = vmatpush3.bf16.msra.mxu0 %v3925_v50  ;;  %v3971_v53 = vsel %vm1515_vm3, %v3914_v20, 0  ;;  %v4063_v29 = vsel %vm1515_vm3, %v3916_v59, 0  ;;  %v3918_v61 = vpack.c.bf16 %v3431_v18, %v3431_v18  ;;  %v3920_v41 = vpack.c.bf16 %v3432_v6, %v3432_v6 }
 0xd5b   :  { %5303 = vmatpush3.bf16.msra.mxu1 %v3971_v53  ;;  %5308 = vmatprep.subr.bf16.mxu0 %v5598_v0  ;;  %v4109_v21 = vsel %vm1515_vm3, %v3917_v4, 0  ;;  %v4201_v46 = vsel %vm1515_vm3, %v3919_v39, 0 }
 0xd5c   :  { %5314 = vmatprep.subr.bf16.mxu1 %v5598_v0  ;;  %v4155_v11 = vsel %vm1515_vm3, %v3918_v61, 0 }
 0xd5d   :  { %5299 = vmatmul.mubr.msk.bf16.vlgmr.msra.gmra.mxu0 %vm1039_vm2, %v3905_v47 }
 0xd5e   :  { %5305 = vmatmul.mubr.msk.bf16.vlgmr.msra.gmra.mxu1 %vm1039_vm2, %v3906_v2  ;;  %5309 = vmatpush3.bf16.msra.mxu0 %v4017_v26 }
 0xd5f   :  { %5315 = vmatpush3.bf16.msra.mxu1 %v4063_v29  ;;  %5310 = vmatprep.mubr.msk.bf16.mxu0 %vm5599_vm0, %v5598_v0 }
 0xd60   :  { %5316 = vmatprep.mubr.msk.bf16.mxu1 %vm5599_vm0, %v5598_v0  ;;  %5320 = vmatprep.subr.bf16.mxu0 %v5598_v0 }
 0xd61   :  { %5326 = vmatprep.subr.bf16.mxu1 %v5598_v0 }
 0xd75   :  { %v3873_v48 = vpop.xlane.xlu1 %3872 }
 0xd76   :  { %5504 = vrcp.f32 %v3873_v48  ;;  %v3876_v13 = vpop.xlane.xlu0 %3875 }
 0xd77   :  { %5506 = vrcp.f32 %v3876_v13 }
 0xd79   :  { %v3882_v25 = vpop.xlane.xlu1 %3881 }
 0xd7a   :  { %5508 = vrcp.f32 %v3882_v25  ;;  %v3879_v51 = vpop.xlane.xlu0 %3878 }
 0xd7b   :  { %5510 = vrcp.f32 %v3879_v51 }
 0xd7d   :  { %v3888_v31 = vpop.xlane.xlu1 %3887 }
 0xd7e   :  { %v3885_v8 = vpop.xlane.xlu0 %3884 }
 0xd7f   :  { %5512 = vrcp.f32 %v3885_v8 }
 0xd80   :  { %5514 = vrcp.f32 %v3888_v31 }
 0xd83   :  { %v5505_v62 = vpop.eup %5504 }
 0xd84   :  { %v5507_v3 = vpop.eup %5506  ;;  %v3899_v12 = vmul.f32 %v5505_v62, %v6438_v19 }
 0xd85   :  { %v3900_v63 = vmul.f32 %v5507_v3, %v6440_v49 }
 0xd86   :  { %v3907_v17 = vpack.c.bf16 %v3899_v12, %v3899_v12 }
 0xd87   :  { %v5509_v24 = vpop.eup %5508  ;;  %v3908_v9 = vpack.c.bf16 %v3900_v63, %v3900_v63 }
 0xd88   :  { %v5511_v28 = vpop.eup %5510  ;;  %5311 = vmatmul.mubr.msk.bf16.vlgmr.msra.gmra.mxu0 %vm1039_vm2, %v3907_v17  ;;  %v3902_v49 = vmul.f32 %v5509_v24, %v6444_v55 }
 0xd89   :  { %5317 = vmatmul.mubr.msk.bf16.vlgmr.msra.gmra.mxu1 %vm1039_vm2, %v3908_v9  ;;  %5321 = vmatpush3.bf16.msra.mxu0 %v4109_v21  ;;  %v3901_v19 = vmul.f32 %v5511_v28, %v6448_v36  ;;  %v4247_v36 = vsel %vm1515_vm3, %v3920_v41, 0 }
 0xd8a   :  { %5327 = vmatpush3.bf16.msra.mxu1 %v4155_v11  ;;  %5322 = vmatprep.mubr.msk.bf16.mxu0 %vm5599_vm0, %v5598_v0  ;;  %v3910_v58 = vpack.c.bf16 %v3902_v49, %v3902_v49 }
 0xd8b   :  { %5328 = vmatprep.mubr.msk.bf16.mxu1 %vm5599_vm0, %v5598_v0  ;;  %5332 = vmatprep.subr.bf16.mxu0 %v5598_v0  ;;  %v3909_v42 = vpack.c.bf16 %v3901_v19, %v3901_v19 }
 0xd8c   :  { %5338 = vmatprep.subr.bf16.mxu1 %v5598_v0  ;;  %v5513_v57 = vpop.eup %5512 }
 0xd8d   :  { %v5515_v20 = vpop.eup %5514  ;;  %v3903_v55 = vmul.f32 %v5513_v57, %v6456_v16 }
 0xd8e   :  { %v3904_v50 = vmul.f32 %v5515_v20, %v6452_v37 }
 0xd8f   :  { %v3911_v52 = vpack.c.bf16 %v3903_v55, %v3903_v55 }
 0xd90   :  { %5323 = vmatmul.mubr.msk.bf16.vlgmr.msra.gmra.mxu0 %vm1039_vm2, %v3909_v42  ;;  %v3912_v53 = vpack.c.bf16 %v3904_v50, %v3904_v50 }
 0xd91   :  { %5329 = vmatmul.mubr.msk.bf16.vlgmr.msra.gmra.mxu1 %vm1039_vm2, %v3910_v58  ;;  %5333 = vmatpush3.bf16.msra.mxu0 %v4201_v46 }
 0xd92   :  { %5339 = vmatpush3.bf16.msra.mxu1 %v4247_v36  ;;  %5334 = vmatprep.mubr.msk.bf16.mxu0 %vm5599_vm0, %v5598_v0 }
 0xd93   :  { %5340 = vmatprep.mubr.msk.bf16.mxu1 %vm5599_vm0, %v5598_v0  ;;  %5344 = vmatprep.subr.bf16.mxu0 %v5598_v0 }
 0xd94   :  { %5352 = vmatprep.subr.bf16.mxu1 %v5598_v0 }
 0xd98   :  { %5335 = vmatmul.mubr.msk.bf16.vlgmr.msra.gmra.mxu0 %vm1039_vm2, %v3911_v52 }
 0xd99   :  { %5341 = vmatmul.mubr.msk.bf16.vlgmr.msra.gmra.mxu1 %vm1039_vm2, %v3912_v53  ;;  %5348 = vmatprep.mubr.msk.bf16.mxu0 %vm5599_vm0, %v5598_v0 }
 0xd9a   :  { %5356 = vmatprep.mubr.msk.bf16.mxu1 %vm5599_vm0, %v5598_v0 }
 0xe1d   :  { %v3961_v16 = vpop.f32.mrf.mxu0 }
 0xe1e   :  { %v4007_v59 = vpop.f32.mrf.mxu1 }
 0xe1f   :  { %v5300_v47 = vpop.f32.mrf.mxu0 }
 0xe20   :  { %v5306_v37 = vpop.f32.mrf.mxu1 }
 0xe21   :  { %v3964_v2 = vpop.f32.mrf.mxu0 }
 0xe22   :  { %v4010_v26 = vpop.f32.mrf.mxu1 }
 0xe23   :  { %v5301_v29 = vpop.f32.mrf.mxu0 }
 0xe24   :  { %v5307_v48 = vpop.f32.mrf.mxu1 }
 0xe48   :  { %v4053_v13 = vpop.f32.mrf.mxu0 }
 0xe49   :  { %v4099_v54 = vpop.f32.mrf.mxu1 }
 0xe4a   :  { %v5312_v32 = vpop.f32.mrf.mxu0 }
 0xe4b   :  { %v5318_v25 = vpop.f32.mrf.mxu1 }
 0xe4c   :  { %v4056_v43 = vpop.f32.mrf.mxu0 }
 0xe4d   :  { %v4102_v44 = vpop.f32.mrf.mxu1 }
 0xe4e   :  { %v5313_v51 = vpop.f32.mrf.mxu0 }
 0xe4f   :  { %v5319_v15 = vpop.f32.mrf.mxu1 }
 0xe50   :  { %v4145_v56 = vpop.f32.mrf.mxu0 }
 0xe51   :  { %v4191_v1 = vpop.f32.mrf.mxu1  ;;  %v4289_v62 = vcombine.low %v3961_v16, %v4145_v56  ;;  %v4290_v3 = vcombine.high %v3961_v16, %v4145_v56 }
 0xe52   :  { %v5324_v35 = vpop.f32.mrf.mxu0  ;;  %v4357_v4 = vcombine.low %v4007_v59, %v4191_v1  ;;  %v4358_v63 = vcombine.high %v4007_v59, %v4191_v1 }
 0xe53   :  { %v5330_v8 = vpop.f32.mrf.mxu1  ;;  %v4297_v11 = vrot.slane %v4289_v62, %v5726_v27  ;;  %v4304_v6 = vrot.slane %v4290_v3, %v5726_v27 }
 0xe54   :  { %v4148_v31 = vpop.f32.mrf.mxu0  ;;  %v4365_v41 = vrot.slane %v4357_v4, %v5726_v27  ;;  %v4372_v42 = vrot.slane %v4358_v63, %v5726_v27 }
 0xe55   :  { %v4194_v33 = vpop.f32.mrf.mxu1 }
 0xe56   :  { %v5325_v18 = vpop.f32.mrf.mxu0 }
 0xe57   :  { %v5331_v12 = vpop.f32.mrf.mxu1 }
 0xe58   :  { %v4237_v61 = vpop.f32.mrf.mxu0  ;;  %v5436_v12 = vld [vmem:[%s6669_s2 + $0x18] sm:$0xff]  }
 0xe59   :  { %v4305_v17 = vcombine.low %v4053_v13, %v4237_v61  ;;  %v4306_v24 = vcombine.high %v4053_v13, %v4237_v61  ;;  %v4283_v9 = vpop.f32.mrf.mxu1  ;;  %5345 = vmatpush3.bf16.msra.mxu0 %v5436_v12 }
 0xe5a   :  { %v4373_v28 = vcombine.low %v4099_v54, %v4283_v9  ;;  %v4374_v21 = vcombine.high %v4099_v54, %v4283_v9  ;;  %v5336_v5 = vpop.f32.mrf.mxu0  ;;  %5346 = vmatprep.subr.bf16.mxu0 %v5598_v0 }
 0xe5b   :  { %v4313_v19 = vrot.slane %v4305_v17, %v5726_v27  ;;  %v4320_v49 = vrot.slane %v4306_v24, %v5726_v27  ;;  %v5342_v39 = vpop.f32.mrf.mxu1 }
 0xe5c   :  { %v4381_v57 = vrot.slane %v4373_v28, %v5726_v27  ;;  %v4388_v58 = vrot.slane %v4374_v21, %v5726_v27  ;;  %v4240_v20 = vpop.f32.mrf.mxu0 }
 0xe5d   :  { %v4321_v46 = vcombine.low %v4297_v11, %v4313_v19  ;;  %v4322_v36 = vcombine.high %v4297_v11, %v4313_v19  ;;  %v4337_v55 = vcombine.low %v4304_v6, %v4320_v49  ;;  %v4338_v50 = vcombine.high %v4304_v6, %v4320_v49  ;;  %v4286_v52 = vpop.f32.mrf.mxu1 }
 0xe5e   :  { %v4389_v53 = vcombine.low %v4365_v41, %v4381_v57  ;;  %v4390_v16 = vcombine.high %v4365_v41, %v4381_v57  ;;  %v4405_v59 = vcombine.low %v4372_v42, %v4388_v58  ;;  %v4406_v47 = vcombine.high %v4372_v42, %v4388_v58  ;;  %v5337_v37 = vpop.f32.mrf.mxu0 }
 0xe5f   :  { %v4329_v2 = vrot.slane %v4321_v46, %v5729_v34  ;;  %v4336_v26 = vrot.slane %v4322_v36, %v5729_v34  ;;  %v4345_v29 = vrot.slane %v4337_v55, %v5729_v34  ;;  %v4352_v48 = vrot.slane %v4338_v50, %v5729_v34  ;;  %v5343_v13 = vpop.f32.mrf.mxu1  ;;  %v5437_v46 = vld [vmem:[%s6669_s2 + $0x10] sm:$0xff]  }
 0xe60   :  { %v4397_v54 = vrot.slane %v4389_v53, %v5729_v34  ;;  %v4404_v32 = vrot.slane %v4390_v16, %v5729_v34  ;;  %v4413_v25 = vrot.slane %v4405_v59, %v5729_v34  ;;  %v4420_v43 = vrot.slane %v4406_v47, %v5729_v34  ;;  %5347 = vmatpush3.bf16.msra.mxu0 %v5437_v46 }
 0xe61   :  { %v4425_v44 = vcombine.low %v4329_v2, %v4336_v26  ;;  %v5001_v51 = vcombine.high %v4329_v2, %v4336_v26  ;;  %v4441_v15 = vcombine.low %v4345_v29, %v4352_v48  ;;  %v5002_v56 = vcombine.high %v4345_v29, %v4352_v48  ;;  %5360 = vmatprep.subr.bf16.mxu0 %v5598_v0 }
 0xe62   :  { %v4493_v1 = vcombine.low %v4397_v54, %v4404_v32  ;;  %v5003_v35 = vcombine.high %v4397_v54, %v4404_v32  ;;  %v4509_v8 = vcombine.low %v4413_v25, %v4420_v43  ;;  %v5004_v31 = vcombine.high %v4413_v25, %v4420_v43 }
 0xe63   :  { %v4432_v33 = vrot.slane %v4425_v44, %v5726_v27  ;;  %v4440_v18 = vrot.slane %v5001_v51, %v5726_v27  ;;  %v4448_v62 = vrot.slane %v4441_v15, %v5726_v27  ;;  %v4456_v3 = vrot.slane %v5002_v56, %v5726_v27 }
 0xe64   :  { %v4500_v4 = vrot.slane %v4493_v1, %v5726_v27  ;;  %v4508_v63 = vrot.slane %v5003_v35, %v5726_v27  ;;  %v4516_v61 = vrot.slane %v4509_v8, %v5726_v27  ;;  %v4524_v17 = vrot.slane %v5004_v31, %v5726_v27 }
 0xe65   :  { %v4458_v24 = vcombine.high %v4432_v33, %v4440_v18  ;;  %v4474_v9 = vcombine.high %v4448_v62, %v4456_v3  ;;  %v4457_v28 = vcombine.low %v4432_v33, %v4440_v18  ;;  %v4473_v21 = vcombine.low %v4448_v62, %v4456_v3  ;;  %v6602_v33 = vld [vmem:[#allocation5 + $0x8] sm:$0xff] }
 0xe66   :  { %v4526_v5 = vcombine.high %v4500_v4, %v4508_v63  ;;  %v4542_v11 = vcombine.high %v4516_v61, %v4524_v17  ;;  %v4525_v6 = vcombine.low %v4500_v4, %v4508_v63  ;;  %v4541_v19 = vcombine.low %v4516_v61, %v4524_v17 }
 0xe67   :  { %v4472_v49 = vrot.slane %v4458_v24, %v5729_v34  ;;  %v4488_v39 = vrot.slane %v4474_v9, %v5729_v34  ;;  %v4465_v41 = vrot.slane %v4457_v28, %v5729_v34  ;;  %v4481_v42 = vrot.slane %v4473_v21, %v5729_v34 }
 0xe68   :  { %v4540_v27 = vrot.slane %v4526_v5, %v5729_v34  ;;  %v4556_v57 = vrot.slane %v4542_v11, %v5729_v34  ;;  %v4533_v58 = vrot.slane %v4525_v6, %v5729_v34  ;;  %v4549_v20 = vrot.slane %v4541_v19, %v5729_v34 }
 0xe69   :  { %v4491_v36 = vcombine.low %v4472_v49, %v4488_v39  ;;  %v4490_v55 = vcombine.high %v4465_v41, %v4481_v42  ;;  %v4489_v50 = vcombine.low %v4465_v41, %v4481_v42  ;;  %v4492_v37 = vcombine.high %v4472_v49, %v4488_v39  ;;  %v5439_v42 = vld [vmem:[%s6670_s3 + $0x10] sm:$0xff]  }
 0xe6a   :  { %v4559_v52 = vcombine.low %v4540_v27, %v4556_v57  ;;  %v4557_v53 = vcombine.low %v4533_v58, %v4549_v20  ;;  %v4558_v16 = vcombine.high %v4533_v58, %v4549_v20  ;;  %v4560_v2 = vcombine.high %v4540_v27, %v4556_v57  ;;  %v5440_v27 = vld [vmem:[%s6671_s4 + $0x38] sm:$0xff]  }
 0xe6b   :  { %v4595_v18 = vrot.slane %v6602_v33, %v2188_v30 }
 0xe6c   :  { %v5414_v59 = vpack.i.bf16 %v4559_v52, %v4491_v36  ;;  %v5409_v47 = vpack.i.bf16 %v4558_v16, %v4490_v55  ;;  %v5419_v34 = vpack.i.bf16 %v4560_v2, %v4492_v37  ;;  %v4689_v37 = vrot.slane %v6602_v33, %v2283_v60  ;;  %v5443_v60 = vld [vmem:[%s6671_s4 + $0x20] sm:$0xff]  }
 0xe6e   :  { %5415 = vrot.lane.b32.xlu1 %v5414_v59, %s5613_s28  ;;  %5410 = vrot.lane.b32.xlu0 %v5409_v47, %s5596_s25 }
 0xe72   :  { %5420 = vrot.lane.b32.xlu1 %v5419_v34, %s5614_s29 }
 0xee0   :  { %v5416_v26 = vpop.permute.xlu1 %5415  ;;  %v5411_v29 = vpop.permute.xlu0 %5410 }
 0xee1   :  { %v5413_v48 = vunpack.i.h.bf16 %v5411_v29  ;;  %v5412_v13 = vunpack.i.l.bf16 %v5411_v29  ;;  %v5418_v54 = vunpack.i.h.bf16 %v5416_v26  ;;  %v5417_v32 = vunpack.i.l.bf16 %v5416_v26 }
 0xee3   :  { %v4586_v25 = vsel %vm1039_vm2, %v4557_v53, %v5413_v48  ;;  %v4585_v43 = vsel %vm1039_vm2, %v4489_v50, %v5412_v13  ;;  %v4683_v53 = vrot.slane %v6602_v33, %v2277_v40  ;;  %v5441_v48 = vld [vmem:[%s6671_s4 + $0x30] sm:$0xff]   ;;  %v5442_v40 = vld [vmem:[%s6671_s4 + $0x28] sm:$0xff]   ;;  %v4696_v13 = vrot.slane %v6602_v33, %v2290_v14  ;;  %s5615_s4 = smov [#allocation7]  }
 0xee4   :  { %v5421_v44 = vpop.permute.xlu1 %5420  ;;  %v4587_v56 = vsel %vm2179_vm4, %v4585_v43, %v5417_v32  ;;  %v4588_v1 = vsel %vm2179_vm4, %v4586_v25, %v5418_v54  ;;  %s4875_s5 = sshll.u32 %s5615_s4, 4  ;;  %s4876_s5 = int_to_ptr.vmem [resolvable:$true] %s4875_s5 }
 0xee5   :  { %v5423_v51 = vunpack.i.h.bf16 %v5421_v44  ;;  %v5422_v15 = vunpack.i.l.bf16 %v5421_v44  ;;  %s5568_s10 = scalar_lea.vmem %s4876_s5, 256  ;;  %p5573_p11 = scmp.lt.s32.totalorder %s4876_s5, %s4876_s5 }
 0xee6   :  { %p5569_p10 = scmp.ne.s32.totalorder %s4876_s5, %s5568_s10  ;;  %p5574_p12 = scmp.lt.s32.totalorder %s5568_s10, %s5568_s10 }
 0xee7   :  { %v4589_v35 = vsel %vm2182_vm5, %v4587_v56, %v5422_v15  ;;  %v4590_v8 = vsel %vm2182_vm5, %v4588_v1, %v5423_v51 }
 0xee8   :  { %v4591_v31 = vpack.c.bf16 %v4590_v8, %v4589_v35  ;;  %p5575_p13 = por %p5574_p12, %p5573_p11 }
 0xeea   :  { %5349 = vmatmul.mubr.msk.bf16.vlgmr.msra.gmra.mxu0 %vm94_vm1, %v4591_v31  ;;  %p5576_p0 = pnand %p5575_p13, %p5569_p10 }
 0xeeb   :  { %5368 = vmatprep.mubr.msk.bf16.mxu0 %vm5599_vm0, %v5598_v0  ;;  %5361 = vmatpush3.bf16.msra.mxu0 %v5440_v27 }
 0xeec   :  { %5362 = vmatprep.subr.bf16.mxu0 %v5598_v0 }
 0xeef   :  { %5363 = vmatpush3.bf16.msra.mxu0 %v5441_v48 }
 0xef0   :  { %5364 = vmatprep.subr.bf16.mxu0 %v5598_v0 }
 0xef3   :  { %5365 = vmatpush3.bf16.msra.mxu0 %v5442_v40 }
 0xef4   :  { %5366 = vmatprep.subr.bf16.mxu0 %v5598_v0 }
 0xef7   :  { %5367 = vmatpush3.bf16.msra.mxu0 %v5443_v60 }
 0xfaa   :  { %v4645_v62 = vpop.f32.mrf.mxu0 }
 0xfab   :  { %v4646_v3 = vadd.f32 %v4645_v62, %v4595_v18 }
 0xfac   :  { %v5350_v12 = vpop.f32.mrf.mxu0 }
 0xfad   :  { %v4652_v4 = vadd.f32 %v4646_v3, %v6175_v22 }
 0xfae   :  { %v4648_v63 = vpop.f32.mrf.mxu0 }
 0xfaf   :  { %v4649_v61 = vadd.f32 %v4648_v63, %v4595_v18  ;;  %v4654_v17 = vsel %vm94_vm1, %v4652_v4, 0.0 }
 0xfb0   :  { %4655 = vadd.xlane.f32.xlu0 %v4654_v17  ;;  %v5351_v24 = vpop.f32.mrf.mxu0 }
 0xfb1   :  { %v4653_v9 = vadd.f32 %v4649_v61, %v6177_v23  ;;  %v5438_v23 = vld [vmem:[%s6670_s3 + $0x18] sm:$0xff]  }
 0xfb2   :  { %5353 = vmatpush3.bf16.msra.mxu1 %v5438_v23  ;;  %v4859_v23 = vrot.slane %v6602_v33, %v2454_v45 }
 0xfb3   :  { %v4657_v28 = vsel %vm94_vm1, %v4653_v9, 0.0  ;;  %5354 = vmatprep.subr.bf16.mxu1 %v5598_v0  ;;  %v4759_v0 = vrot.slane %v6602_v33, %v2353_v38 }
 0xfb4   :  { %4658 = vadd.xlane.f32.xlu1 %v4657_v28 }
 0xfb6   :  { %5355 = vmatpush3.bf16.msra.mxu1 %v5439_v42 }
0x1039   :  { %v4656_v21 = vpop.xlane.xlu0 %4655 }
0x103a   :  { %v4660_v5 = vmul.f32 0.03125, %v4656_v21 }
0x103c   :  { %v4662_v11 = vsub.f32 %v4652_v4, %v4660_v5 }
0x103d   :  { %v4659_v30 = vpop.xlane.xlu1 %4658 }
0x103e   :  { %v4661_v6 = vmul.f32 0.03125, %v4659_v30  ;;  %v4664_v19 = vmul.f32 %v4662_v11, %v4662_v11 }
0x1040   :  { %v4663_v49 = vsub.f32 %v4653_v9, %v4661_v6  ;;  %v4666_v22 = vsel %vm94_vm1, %v4664_v19, 0.0 }
0x1041   :  { %4667 = vadd.xlane.f32.xlu0 %v4666_v22 }
0x1042   :  { %v4665_v39 = vmul.f32 %v4663_v49, %v4663_v49 }
0x1044   :  { %v4669_v41 = vsel %vm94_vm1, %v4665_v39, 0.0 }
0x1045   :  { %4670 = vadd.xlane.f32.xlu0 %v4669_v41 }
0x10ca   :  { %v4668_v57 = vpop.xlane.xlu0 %4667 }
0x10cb   :  { %v4672_v58 = vmul.f32 0.03125, %v4668_v57  ;;  %v4865_v57 = vrot.slane %v6602_v33, %v2460_v10 }
0x10cd   :  { %v4674_v20 = vadd.f32 1e-05, %v4672_v58 }
0x10ce   :  { %v4671_v46 = vpop.xlane.xlu0 %4670 }
0x10cf   :  { %5516 = vrsqrt.f32 %v4674_v20  ;;  %v4673_v36 = vmul.f32 0.03125, %v4671_v46 }
0x10d1   :  { %v4675_v55 = vadd.f32 1e-05, %v4673_v36 }
0x10d3   :  { %5518 = vrsqrt.f32 %v4675_v55 }
0x10dc   :  { %v5517_v50 = vpop.eup %5516 }
0x10dd   :  { %v4678_v52 = vmul.f32 %v5517_v50, %v4662_v11 }
0x10df   :  { %v4684_v47 = vmul.f32 %v4683_v53, %v4678_v52 }
0x10e0   :  { %v5519_v16 = vpop.eup %5518 }
0x10e1   :  { %v4679_v59 = vmul.f32 %v5519_v16, %v4663_v49  ;;  %v4690_v34 = vadd.f32 %v4689_v37, %v4684_v47 }
0x10e3   :  { %v4685_v2 = vmul.f32 %v4683_v53, %v4679_v59 }
0x10e5   :  { %v4691_v26 = vadd.f32 %v4689_v37, %v4685_v2 }
0x10e7   :  { %v4692_v29 = vpack.c.bf16 %v4691_v26, %v4690_v34 }
0x10e9   :  { %5357 = vmatmul.mubr.msk.bf16.vlgmr.msra.gmra.mxu1 %vm94_vm1, %v4692_v29 }
0x11a9   :  { %v4746_v54 = vpop.f32.mrf.mxu1 }
0x11aa   :  { %v4747_v25 = vadd.f32 %v4746_v54, %v4696_v13 }
0x11ab   :  { %v5358_v32 = vpop.f32.mrf.mxu1 }
0x11ac   :  { %v4753_v15 = vmax.f32 %v4747_v25, 0.0 }
0x11ad   :  { %v4749_v43 = vpop.f32.mrf.mxu1 }
0x11ae   :  { %v4750_v44 = vadd.f32 %v4749_v43, %v4696_v13 }
0x11af   :  { %v5359_v51 = vpop.f32.mrf.mxu1 }
0x11b0   :  { %v4754_v56 = vmax.f32 %v4750_v44, 0.0 }
0x11b2   :  { %v4755_v1 = vpack.c.bf16 %v4754_v56, %v4753_v15 }
0x11b4   :  { %5369 = vmatmul.mubr.msk.bf16.vlgmr.msra.gmra.mxu0 %vm2379_vm6, %v4755_v1 }
0x1274   :  { %v4821_v35 = vpop.f32.mrf.mxu0 }
0x1275   :  { %v4822_v8 = vadd.f32 %v4821_v35, %v4759_v0 }
0x1276   :  { %v5370_v31 = vpop.f32.mrf.mxu0 }
0x1277   :  { %v4828_v18 = vadd.f32 %v4822_v8, %v4690_v34 }
0x1278   :  { %v4824_v14 = vpop.f32.mrf.mxu0 }
0x1279   :  { %v4825_v62 = vadd.f32 %v4824_v14, %v4759_v0  ;;  %v4830_v3 = vsel %vm94_vm1, %v4828_v18, 0.0 }
0x127a   :  { %4831 = vadd.xlane.f32.xlu1 %v4830_v3  ;;  %v5371_v12 = vpop.f32.mrf.mxu0 }
0x127b   :  { %v4829_v4 = vadd.f32 %v4825_v62, %v4691_v26 }
0x127d   :  { %v4833_v63 = vsel %vm94_vm1, %v4829_v4, 0.0 }
0x127e   :  { %4834 = vadd.xlane.f32.xlu0 %v4833_v63 }
0x1303   :  { %v4832_v61 = vpop.xlane.xlu1 %4831 }
0x1304   :  { %v4836_v17 = vmul.f32 0.03125, %v4832_v61 }
0x1306   :  { %v4838_v24 = vsub.f32 %v4828_v18, %v4836_v17 }
0x1307   :  { %v4835_v9 = vpop.xlane.xlu0 %4834 }
0x1308   :  { %v4837_v28 = vmul.f32 0.03125, %v4835_v9  ;;  %v4840_v38 = vmul.f32 %v4838_v24, %v4838_v24 }
0x130a   :  { %v4839_v21 = vsub.f32 %v4829_v4, %v4837_v28  ;;  %v4842_v5 = vsel %vm94_vm1, %v4840_v38, 0.0 }
0x130b   :  { %4843 = vadd.xlane.f32.xlu1 %v4842_v5 }
0x130c   :  { %v4841_v11 = vmul.f32 %v4839_v21, %v4839_v21 }
0x130e   :  { %v4845_v30 = vsel %vm94_vm1, %v4841_v11, 0.0 }
0x130f   :  { %4846 = vadd.xlane.f32.xlu0 %v4845_v30 }
0x1394   :  { %v4844_v6 = vpop.xlane.xlu1 %4843 }
0x1395   :  { %v4848_v19 = vmul.f32 0.03125, %v4844_v6 }
0x1397   :  { %v4850_v49 = vadd.f32 1e-05, %v4848_v19 }
0x1398   :  { %v4847_v22 = vpop.xlane.xlu0 %4846 }
0x1399   :  { %5520 = vrsqrt.f32 %v4850_v49  ;;  %v4849_v39 = vmul.f32 0.03125, %v4847_v22 }
0x139b   :  { %v4851_v41 = vadd.f32 1e-05, %v4849_v39 }
0x139d   :  { %5522 = vrsqrt.f32 %v4851_v41 }
0x13a6   :  { %v5521_v42 = vpop.eup %5520 }
0x13a7   :  { %v4854_v27 = vmul.f32 %v5521_v42, %v4838_v24 }
0x13a9   :  { %v4860_v58 = vmul.f32 %v4859_v23, %v4854_v27 }
0x13aa   :  { %v5523_v20 = vpop.eup %5522 }
0x13ab   :  { %v4855_v46 = vmul.f32 %v5523_v20, %v4839_v21  ;;  %v4866_v36 = vadd.f32 %v4865_v57, %v4860_v58 }
0x13ad   :  { %v4861_v55 = vmul.f32 %v4859_v23, %v4855_v46  ;;  %4868 = vst.msk [vmem:[#allocation7] sm:$0xff] %vm94_vm1, %v4866_v36 }
0x13af   :  { %v4867_v50 = vadd.f32 %v4865_v57, %v4861_v55 }
0x13b1   :  { %4869 = vst.msk [vmem:[#allocation7 + $0x8] sm:$0xff] %vm94_vm1, %v4867_v50 }
0x13b2   :  { %5579 = shalt.err (!%p5576_p0)
}
0x13b3   :  { %4881 = dma.vmem_to_hbm [thread:$0]  %s4876_s5, 256, %s6673_s6, [#allocation4], %s5595_s24, %s5595_s24, %s5596_s25  }
0x13b4   :  { %5592 = dma.done.wait [#allocation4], 256  }
0x13b5   :  { %5593 = vsyncadd [#allocation4], 4294967040 }
0x13b6   :  { %4885 = vsyncpa [#allocation3], 1 }
0x13b7   :  { %4886 = vsyncpa [#allocation6], 1 }
0x13b8   :  { %4887 = vsyncpa [#allocation4], 1 }

</bundles_post_ra>
